<compile_context>
chip_gen: v6e
topology: v6e:2x2x1
jax: 0.10.0
libtpu: 0.0.40
codegen_flags: <defaults>
</compile_context>

<pallas_src>
import functools

import jax
import jax.numpy as jnp
from jax.experimental import pallas as pl
from jax.experimental.pallas import tpu as pltpu


def _round_up(v, m):
    return (v + m - 1) // m * m


def _chip_vmem_capacity_bytes():
    """Per-core VMEM capacity; conservative (v7x-sized) fallback on failure."""
    try:
        return int(pltpu.get_tpu_info().vmem_capacity_bytes)
    except Exception:
        return 64 * 1024 * 1024


def _is_v5_tpu():
    try:
        return "v5" in jax.devices()[0].device_kind.lower()
    except Exception:
        return False


def _pick_tiles(B, H, WC, TOTW, in_itemsize, stage_itemsize, budget):
    """Pick (TB, TH) batch / row tile sizes.

    TH is a multiple of 8 dividing H (or H itself), as large as the VMEM
    budget allows.  TB grows only while per-step work is small, and only
    while the grid keeps >= 2 steps (megacore / 2 TensorCores).
    """
    def fits(tb, th):
        tiles = 4 * tb * th * WC * in_itemsize        # 2x in + 2x out (dbl-buffered)
        halo = 4 * tb * 2 * WC * in_itemsize
        scratch = (th + 2) * TOTW * stage_itemsize
        return tiles + halo + scratch <= budget

    th = None
    smallest = None
    for t in range(8, min(H, 512) + 1, 8):
        if H % t == 0:
            if smallest is None:
                smallest = t
            if fits(1, t):
                th = t
    if th is None:
        th = smallest if smallest is not None else H   # best effort / full H
    # Prefer >= 2 grid steps when B is small (single-image calls on v7x).
    if th % 8 == 0 and th > 8 and B * (H // th) < 2:
        for t in range(th - 8, 7, -8):
            if H % t == 0:
                th = t
                break
    n_h = H // th

    tb = 1
    for cand in range(2, B + 1):
        if B % cand:
            continue
        if tb * th * WC * in_itemsize >= (512 << 10):   # per-step tile big enough
            break
        if not fits(cand, th) or (B // cand) * n_h < 2:
            break
        tb = cand
    return tb, th


def _dwconv3x3_kernel(xm_ref, halo_ref, w_ref, b_ref, o_ref, xbuf, *, C, PAD):
    # xm_ref  : (TB, TH, W*C)     main rows of this tile
    # halo_ref: (TB, 1, 2, W*C)   row above (idx 0) / below (idx 1) the tile
    #                             (zeros at the image top/bottom borders)
    # w_ref   : (9, W*C)  f32     tap (ky*3+kx) weights, per channel, tiled along W
    # b_ref   : (1, W*C)  f32     bias, per channel, tiled along W
    # o_ref   : (TB, TH, W*C)     output tile
    # xbuf    : (TH+2, TOTW)      staging scratch; image data at lane-aligned col PAD
    TB, TH, WC = o_ref.shape
    TOTW = xbuf.shape[-1]
    f32 = jnp.float32

    # Zero ONLY the left/right border column strips (the conv's horizontal
    # "same" padding).  Done every step; the interior is fully overwritten.
    xbuf[:, :PAD] = jnp.zeros((TH + 2, PAD), xbuf.dtype)
    xbuf[:, PAD + WC:] = jnp.zeros((TH + 2, TOTW - PAD - WC), xbuf.dtype)

    # Hoisted out of all loops: weights arrive already in f32 (cast in the
    # wrapper), bias is folded into the accumulator init.
    w_rows = [w_ref[k, :] for k in range(9)]               # 9 x (WC,) f32
    bias_init = jnp.broadcast_to(b_ref[0, :], (TH, WC))    # (TH, WC) f32

    for b in range(TB):                                    # static unroll
        # Stage main rows (lane-aligned store at column PAD) plus 1-row halos.
        xbuf[1:TH + 1, PAD:PAD + WC] = xm_ref[b].astype(xbuf.dtype)
        xbuf[0:1, PAD:PAD + WC] = halo_ref[b, 0, 0:1, :].astype(xbuf.dtype)
        xbuf[TH + 1:TH + 2, PAD:PAD + WC] = halo_ref[b, 0, 1:2, :].astype(xbuf.dtype)

        # 9 taps = statically shifted windows of the padded tile; the centre
        # (kx == 1) windows start at the 128-aligned column PAD.
        # TODO(synk): the kx=0/kx=2 windows could be derived from one per-ky
        # load via an XLU lane rotation (pltpu.roll) to cut vld further.
        acc = bias_init
        for ky in range(3):
            for kx in range(3):
                off = PAD + (kx - 1) * C
                win = xbuf[ky:ky + TH, off:off + WC].astype(f32)
                acc = acc + win * w_rows[3 * ky + kx]
        o_ref[b] = acc.astype(o_ref.dtype)


def dwconv_pallas(x, H, W, weight, bias):
    """DWConv.forward: x (B, N=H*W, C) -> depthwise 3x3 conv + bias -> (B, N, C).

    weight: (3, 3, C) per-channel taps (== torch weight[:, 0].permute(1, 2, 0)).
    bias  : (C,)
    """
    B, N, C = x.shape
    assert N == H * W, (N, H, W)
    WC = W * C

    # Lane-aligned staging geometry: image data lives at scratch columns
    # [PAD, PAD + WC); both pads are >= C wide (the horizontal "same" padding)
    # and the interior start is a multiple of 128 lanes.
    PAD = _round_up(C, 128)
    PAD_R = _round_up(WC + C, 128) - WC
    TOTW = PAD + WC + PAD_R
    # TODO(synk): for very large W*C additionally tile the lane (W) axis, and
    # pad C in the wrapper when W*C % 128 != 0 so output stores stay unmasked.

    # bf16 staging on chips with a bf16 VPU (v6e/v7x); f32 elsewhere (v5e).
    if x.dtype == jnp.bfloat16 and not _is_v5_tpu():
        stage_dtype = jnp.bfloat16
    else:
        stage_dtype = jnp.float32

    vmem_cap = _chip_vmem_capacity_bytes()
    budget = max(4 << 20, int(vmem_cap * 0.30))
    TB, TH = _pick_tiles(B, H, WC, TOTW, x.dtype.itemsize,
                         jnp.dtype(stage_dtype).itemsize, budget)
    n_b, n_h = B // TB, H // TH

    xr = x.reshape(B, H, WC)                   # free view: lane axis = W*C

    # One merged halo input: halo[:, i, 0] = row above tile i, halo[:, i, 1] =
    # row below (zeros at the image borders).  Only 2 extra rows of HBM traffic
    # per tile; keeps every BlockSpec a plain non-overlapping block.
    zrow = jnp.zeros((B, 1, WC), x.dtype)
    top = jnp.concatenate([zrow, xr[:, TH - 1:H - 1:TH, :]], axis=1)   # (B, n_h, WC)
    bot = jnp.concatenate([xr[:, TH:H:TH, :], zrow], axis=1)           # (B, n_h, WC)
    halo = jnp.stack([top, bot], axis=2)                               # (B, n_h, 2, WC)

    # Per-channel taps / bias pre-cast to f32 and broadcast along W.
    w_flat = jnp.tile(weight.reshape(9, C).astype(jnp.float32), (1, W))   # (9, WC)
    b_flat = jnp.tile(bias.astype(jnp.float32), W).reshape(1, WC)         # (1, WC)

    kernel = functools.partial(_dwconv3x3_kernel, C=C, PAD=PAD)
    out = pl.pallas_call(
        kernel,
        out_shape=jax.ShapeDtypeStruct((B, H, WC), x.dtype),
        grid=(n_b, n_h),
        in_specs=[
            pl.BlockSpec((TB, TH, WC), lambda bb, h: (bb, h, 0)),
            pl.BlockSpec((TB, 1, 2, WC), lambda bb, h: (bb, h, 0, 0)),
            pl.BlockSpec((9, WC), lambda bb, h: (0, 0)),
            pl.BlockSpec((1, WC), lambda bb, h: (0, 0)),
        ],
        out_specs=pl.BlockSpec((TB, TH, WC), lambda bb, h: (bb, h, 0)),
        scratch_shapes=[pltpu.VMEM((TH + 2, TOTW), stage_dtype)],
        compiler_params=pltpu.CompilerParams(
            dimension_semantics=("parallel", "parallel"),
            vmem_limit_bytes=int(vmem_cap * 0.45)),
    )(xr, halo, w_flat, b_flat)
    return out.reshape(B, N, C)


def _reference_forward(x, H, W, weight, bias):
    """Pure-JAX reference (grouped lax conv) mirroring the PyTorch module."""
    B, N, C = x.shape
    xi = jnp.transpose(x.reshape(B, H, W, C), (0, 3, 1, 2))          # (B,C,H,W)
    w_oihw = jnp.transpose(weight, (2, 0, 1))[:, None, :, :]         # (C,1,3,3)
    y = jax.lax.conv_general_dilated(
        xi, w_oihw, window_strides=(1, 1), padding=((1, 1), (1, 1)),
        dimension_numbers=("NCHW", "OIHW", "NCHW"), feature_group_count=C)
    y = y + bias[None, :, None, None]
    return jnp.transpose(y.reshape(B, C, N), (0, 2, 1))              # (B,N,C)


if __name__ == "__main__":
    key = jax.random.PRNGKey(0)
    kx, kw, kb = jax.random.split(key, 3)

    B, H, W, C = 2, 16, 16, 32        # dim = C = 32, N = H*W = 256
    N = H * W
    x = jax.random.normal(kx, (B, N, C), jnp.float32)
    weight = jax.random.normal(kw, (3, 3, C), jnp.float32) / 3.0
    bias = 0.1 * jax.random.normal(kb, (C,), jnp.float32)

    out = dwconv_pallas(x, H, W, weight, bias)
    out = jax.block_until_ready(out)

    ref = _reference_forward(x, H, W, weight, bias)
    assert out.shape == (B, N, C), out.shape
    max_err = float(jnp.max(jnp.abs(out - ref)))
    assert jnp.allclose(out, ref, atol=1e-4, rtol=1e-4), f"mismatch: {max_err}"

    print("KERNEL_OK")
</pallas_src>

<mosaic_0001>
module attributes {stable_mosaic.version = 11 : i64} {
  func.func @_dwconv3x3_kernel(%arg0: i32, %arg1: i32, %arg2: memref<1x16x512xf32, #tpu.memory_space<vmem>>, %arg3: memref<1x1x2x512xf32, #tpu.memory_space<vmem>>, %arg4: memref<9x512xf32, #tpu.memory_space<vmem>>, %arg5: memref<1x512xf32, #tpu.memory_space<vmem>>, %arg6: memref<1x16x512xf32, #tpu.memory_space<vmem>>, %arg7: memref<18x768xf32, #tpu.memory_space<vmem>>) attributes {dimension_semantics = [#tpu.dimension_semantics<parallel>, #tpu.dimension_semantics<parallel>], iteration_bounds = array<i64: 2, 1>, scalar_prefetch = 0 : i64, scratch_operands = 1 : i64, tpu.core_type = #tpu.core_type<tc>, window_params = [{transform_indices = @transform_0, window_bounds = array<i64: 1, 16, 512>}, {transform_indices = @transform_1, window_bounds = array<i64: 1, 1, 2, 512>}, {pipeline_mode = #tpu.pipeline_mode<synchronous>, transform_indices = @transform_2, window_bounds = array<i64: 9, 512>}, {pipeline_mode = #tpu.pipeline_mode<synchronous>, transform_indices = @transform_3, window_bounds = array<i64: 1, 512>}, {transform_indices = @transform_4, window_bounds = array<i64: 1, 16, 512>}]} {
    %cst = arith.constant 0.000000e+00 : f32
    %0 = vector.broadcast %cst : f32 to vector<18x128xf32>
    %c0 = arith.constant 0 : index
    %c0_0 = arith.constant 0 : index
    %1 = vector.load %arg7[%c0, %c0_0] : memref<18x768xf32, #tpu.memory_space<vmem>>, vector<18x128xf32>
    tpu.vector_store %arg7[%c0, %c0_0], %0 {strides = array<i32>} : memref<18x768xf32, #tpu.memory_space<vmem>>, vector<18x128xf32>,
    %cst_1 = arith.constant 0.000000e+00 : f32
    %2 = vector.broadcast %cst_1 : f32 to vector<18x128xf32>
    %c0_2 = arith.constant 0 : index
    %c640 = arith.constant 640 : index
    %3 = vector.load %arg7[%c0_2, %c640] : memref<18x768xf32, #tpu.memory_space<vmem>>, vector<18x128xf32>
    tpu.vector_store %arg7[%c0_2, %c640], %2 {strides = array<i32>} : memref<18x768xf32, #tpu.memory_space<vmem>>, vector<18x128xf32>,
    %c0_3 = arith.constant 0 : index
    %c0_4 = arith.constant 0 : index
    %4 = vector.load %arg4[%c0_3, %c0_4] : memref<9x512xf32, #tpu.memory_space<vmem>>, vector<1x512xf32>
    %5 = vector.shape_cast %4 : vector<1x512xf32> to vector<512xf32>
    %c1 = arith.constant 1 : index
    %c0_5 = arith.constant 0 : index
    %6 = vector.load %arg4[%c1, %c0_5] : memref<9x512xf32, #tpu.memory_space<vmem>>, vector<1x512xf32>
    %7 = vector.shape_cast %6 : vector<1x512xf32> to vector<512xf32>
    %c2 = arith.constant 2 : index
    %c0_6 = arith.constant 0 : index
    %8 = vector.load %arg4[%c2, %c0_6] : memref<9x512xf32, #tpu.memory_space<vmem>>, vector<1x512xf32>
    %9 = vector.shape_cast %8 : vector<1x512xf32> to vector<512xf32>
    %c3 = arith.constant 3 : index
    %c0_7 = arith.constant 0 : index
    %10 = vector.load %arg4[%c3, %c0_7] : memref<9x512xf32, #tpu.memory_space<vmem>>, vector<1x512xf32>
    %11 = vector.shape_cast %10 : vector<1x512xf32> to vector<512xf32>
    %c4 = arith.constant 4 : index
    %c0_8 = arith.constant 0 : index
    %12 = vector.load %arg4[%c4, %c0_8] : memref<9x512xf32, #tpu.memory_space<vmem>>, vector<1x512xf32>
    %13 = vector.shape_cast %12 : vector<1x512xf32> to vector<512xf32>
    %c5 = arith.constant 5 : index
    %c0_9 = arith.constant 0 : index
    %14 = vector.load %arg4[%c5, %c0_9] : memref<9x512xf32, #tpu.memory_space<vmem>>, vector<1x512xf32>
    %15 = vector.shape_cast %14 : vector<1x512xf32> to vector<512xf32>
    %c6 = arith.constant 6 : index
    %c0_10 = arith.constant 0 : index
    %16 = vector.load %arg4[%c6, %c0_10] : memref<9x512xf32, #tpu.memory_space<vmem>>, vector<1x512xf32>
    %17 = vector.shape_cast %16 : vector<1x512xf32> to vector<512xf32>
    %c7 = arith.constant 7 : index
    %c0_11 = arith.constant 0 : index
    %18 = vector.load %arg4[%c7, %c0_11] : memref<9x512xf32, #tpu.memory_space<vmem>>, vector<1x512xf32>
    %19 = vector.shape_cast %18 : vector<1x512xf32> to vector<512xf32>
    %c8 = arith.constant 8 : index
    %c0_12 = arith.constant 0 : index
    %20 = vector.load %arg4[%c8, %c0_12] : memref<9x512xf32, #tpu.memory_space<vmem>>, vector<1x512xf32>
    %21 = vector.shape_cast %20 : vector<1x512xf32> to vector<512xf32>
    %c0_13 = arith.constant 0 : index
    %c0_14 = arith.constant 0 : index
    %22 = vector.load %arg5[%c0_13, %c0_14] : memref<1x512xf32, #tpu.memory_space<vmem>>, vector<1x512xf32>
    %23 = vector.shape_cast %22 : vector<1x512xf32> to vector<512xf32>
    %24 = vector.shape_cast %23 : vector<512xf32> to vector<1x512xf32>
    %25 = vector.broadcast %24 : vector<1x512xf32> to vector<16x512xf32>
    %c0_15 = arith.constant 0 : index
    %c0_16 = arith.constant 0 : index
    %c0_17 = arith.constant 0 : index
    %26 = vector.load %arg2[%c0_15, %c0_16, %c0_17] : memref<1x16x512xf32, #tpu.memory_space<vmem>>, vector<1x16x512xf32>
    %27 = vector.shape_cast %26 : vector<1x16x512xf32> to vector<16x512xf32>
    %c1_18 = arith.constant 1 : index
    %c128 = arith.constant 128 : index
    %28 = vector.load %arg7[%c1_18, %c128] : memref<18x768xf32, #tpu.memory_space<vmem>>, vector<16x512xf32>
    tpu.vector_store %arg7[%c1_18, %c128], %27 {strides = array<i32>} : memref<18x768xf32, #tpu.memory_space<vmem>>, vector<16x512xf32>,
    %c0_19 = arith.constant 0 : index
    %c0_20 = arith.constant 0 : index
    %c0_21 = arith.constant 0 : index
    %c0_22 = arith.constant 0 : index
    %29 = vector.load %arg3[%c0_19, %c0_20, %c0_21, %c0_22] : memref<1x1x2x512xf32, #tpu.memory_space<vmem>>, vector<1x1x1x512xf32>
    %30 = vector.shape_cast %29 : vector<1x1x1x512xf32> to vector<1x512xf32>
    %c0_23 = arith.constant 0 : index
    %c128_24 = arith.constant 128 : index
    %31 = vector.load %arg7[%c0_23, %c128_24] : memref<18x768xf32, #tpu.memory_space<vmem>>, vector<1x512xf32>
    tpu.vector_store %arg7[%c0_23, %c128_24], %30 {strides = array<i32>} : memref<18x768xf32, #tpu.memory_space<vmem>>, vector<1x512xf32>,
    %c0_25 = arith.constant 0 : index
    %c0_26 = arith.constant 0 : index
    %c1_27 = arith.constant 1 : index
    %c0_28 = arith.constant 0 : index
    %32 = vector.load %arg3[%c0_25, %c0_26, %c1_27, %c0_28] : memref<1x1x2x512xf32, #tpu.memory_space<vmem>>, vector<1x1x1x512xf32>
    %33 = vector.shape_cast %32 : vector<1x1x1x512xf32> to vector<1x512xf32>
    %c17 = arith.constant 17 : index
    %c128_29 = arith.constant 128 : index
    %34 = vector.load %arg7[%c17, %c128_29] : memref<18x768xf32, #tpu.memory_space<vmem>>, vector<1x512xf32>
    tpu.vector_store %arg7[%c17, %c128_29], %33 {strides = array<i32>} : memref<18x768xf32, #tpu.memory_space<vmem>>, vector<1x512xf32>,
    %c0_30 = arith.constant 0 : index
    %c96 = arith.constant 96 : index
    %35 = vector.load %arg7[%c0_30, %c96] : memref<18x768xf32, #tpu.memory_space<vmem>>, vector<16x512xf32>
    %36 = vector.shape_cast %5 : vector<512xf32> to vector<1x512xf32>
    %37 = vector.broadcast %36 : vector<1x512xf32> to vector<16x512xf32>
    %38 = arith.mulf %35, %37 : vector<16x512xf32>
    %39 = arith.addf %25, %38 : vector<16x512xf32>
    %c0_31 = arith.constant 0 : index
    %c128_32 = arith.constant 128 : index
    %40 = vector.load %arg7[%c0_31, %c128_32] : memref<18x768xf32, #tpu.memory_space<vmem>>, vector<16x512xf32>
    %41 = vector.shape_cast %7 : vector<512xf32> to vector<1x512xf32>
    %42 = vector.broadcast %41 : vector<1x512xf32> to vector<16x512xf32>
    %43 = arith.mulf %40, %42 : vector<16x512xf32>
    %44 = arith.addf %39, %43 : vector<16x512xf32>
    %c0_33 = arith.constant 0 : index
    %c160 = arith.constant 160 : index
    %45 = vector.load %arg7[%c0_33, %c160] : memref<18x768xf32, #tpu.memory_space<vmem>>, vector<16x512xf32>
    %46 = vector.shape_cast %9 : vector<512xf32> to vector<1x512xf32>
    %47 = vector.broadcast %46 : vector<1x512xf32> to vector<16x512xf32>
    %48 = arith.mulf %45, %47 : vector<16x512xf32>
    %49 = arith.addf %44, %48 : vector<16x512xf32>
    %c1_34 = arith.constant 1 : index
    %c96_35 = arith.constant 96 : index
    %50 = vector.load %arg7[%c1_34, %c96_35] : memref<18x768xf32, #tpu.memory_space<vmem>>, vector<16x512xf32>
    %51 = vector.shape_cast %11 : vector<512xf32> to vector<1x512xf32>
    %52 = vector.broadcast %51 : vector<1x512xf32> to vector<16x512xf32>
    %53 = arith.mulf %50, %52 : vector<16x512xf32>
    %54 = arith.addf %49, %53 : vector<16x512xf32>
    %c1_36 = arith.constant 1 : index
    %c128_37 = arith.constant 128 : index
    %55 = vector.load %arg7[%c1_36, %c128_37] : memref<18x768xf32, #tpu.memory_space<vmem>>, vector<16x512xf32>
    %56 = vector.shape_cast %13 : vector<512xf32> to vector<1x512xf32>
    %57 = vector.broadcast %56 : vector<1x512xf32> to vector<16x512xf32>
    %58 = arith.mulf %55, %57 : vector<16x512xf32>
    %59 = arith.addf %54, %58 : vector<16x512xf32>
    %c1_38 = arith.constant 1 : index
    %c160_39 = arith.constant 160 : index
    %60 = vector.load %arg7[%c1_38, %c160_39] : memref<18x768xf32, #tpu.memory_space<vmem>>, vector<16x512xf32>
    %61 = vector.shape_cast %15 : vector<512xf32> to vector<1x512xf32>
    %62 = vector.broadcast %61 : vector<1x512xf32> to vector<16x512xf32>
    %63 = arith.mulf %60, %62 : vector<16x512xf32>
    %64 = arith.addf %59, %63 : vector<16x512xf32>
    %c2_40 = arith.constant 2 : index
    %c96_41 = arith.constant 96 : index
    %65 = vector.load %arg7[%c2_40, %c96_41] : memref<18x768xf32, #tpu.memory_space<vmem>>, vector<16x512xf32>
    %66 = vector.shape_cast %17 : vector<512xf32> to vector<1x512xf32>
    %67 = vector.broadcast %66 : vector<1x512xf32> to vector<16x512xf32>
    %68 = arith.mulf %65, %67 : vector<16x512xf32>
    %69 = arith.addf %64, %68 : vector<16x512xf32>
    %c2_42 = arith.constant 2 : index
    %c128_43 = arith.constant 128 : index
    %70 = vector.load %arg7[%c2_42, %c128_43] : memref<18x768xf32, #tpu.memory_space<vmem>>, vector<16x512xf32>
    %71 = vector.shape_cast %19 : vector<512xf32> to vector<1x512xf32>
    %72 = vector.broadcast %71 : vector<1x512xf32> to vector<16x512xf32>
    %73 = arith.mulf %70, %72 : vector<16x512xf32>
    %74 = arith.addf %69, %73 : vector<16x512xf32>
    %c2_44 = arith.constant 2 : index
    %c160_45 = arith.constant 160 : index
    %75 = vector.load %arg7[%c2_44, %c160_45] : memref<18x768xf32, #tpu.memory_space<vmem>>, vector<16x512xf32>
    %76 = vector.shape_cast %21 : vector<512xf32> to vector<1x512xf32>
    %77 = vector.broadcast %76 : vector<1x512xf32> to vector<16x512xf32>
    %78 = arith.mulf %75, %77 : vector<16x512xf32>
    %79 = arith.addf %74, %78 : vector<16x512xf32>
    %c0_46 = arith.constant 0 : index
    %c0_47 = arith.constant 0 : index
    %c0_48 = arith.constant 0 : index
    %80 = vector.load %arg6[%c0_46, %c0_47, %c0_48] : memref<1x16x512xf32, #tpu.memory_space<vmem>>, vector<1x16x512xf32>
    %81 = vector.shape_cast %80 : vector<1x16x512xf32> to vector<16x512xf32>
    %82 = vector.shape_cast %79 : vector<16x512xf32> to vector<1x16x512xf32>
    tpu.vector_store %arg6[%c0_46, %c0_47, %c0_48], %82 {strides = array<i32>} : memref<1x16x512xf32, #tpu.memory_space<vmem>>, vector<1x16x512xf32>,
    return
  }
  func.func @transform_0(%arg0: i32, %arg1: i32) -> (i32, i32, i32) {
    %c0_i32 = arith.constant 0 : i32
    %c0_i32_0 = arith.constant 0 : i32
    return %arg0, %arg1, %c0_i32 : i32, i32, i32
  }
  func.func @transform_1(%arg0: i32, %arg1: i32) -> (i32, i32, i32, i32) {
    %c0_i32 = arith.constant 0 : i32
    %c0_i32_0 = arith.constant 0 : i32
    %c0_i32_1 = arith.constant 0 : i32
    return %arg0, %arg1, %c0_i32, %c0_i32_0 : i32, i32, i32, i32
  }
  func.func @transform_2(%arg0: i32, %arg1: i32) -> (i32, i32) {
    %c0_i32 = arith.constant 0 : i32
    %c0_i32_0 = arith.constant 0 : i32
    %c0_i32_1 = arith.constant 0 : i32
    return %c0_i32, %c0_i32_0 : i32, i32
  }
  func.func @transform_3(%arg0: i32, %arg1: i32) -> (i32, i32) {
    %c0_i32 = arith.constant 0 : i32
    %c0_i32_0 = arith.constant 0 : i32
    %c0_i32_1 = arith.constant 0 : i32
    return %c0_i32, %c0_i32_0 : i32, i32
  }
  func.func @transform_4(%arg0: i32, %arg1: i32) -> (i32, i32, i32) {
    %c0_i32 = arith.constant 0 : i32
    %c0_i32_0 = arith.constant 0 : i32
    return %arg0, %arg1, %c0_i32 : i32, i32, i32
  }
}

</mosaic_0001>

<bundles_post_ra>
// kernel: tpu_custom_call.1
= control target key start
LH: loop header
LB: loop body
LE: loop exit
PB: predicated region body
PF: predicated region fallthrough
CT: control target
= control target key end

     0   :  { %s2641_s0 = inlined_call_operand.hbm [shape: f32[2,16,512], index: 0, kind: input, shape index: {}]   ;;  %s2642_s1 = inlined_call_operand.hbm [shape: f32[2,1,2,512], index: 1, kind: input, shape index: {}]   ;;  %s2643_s2 = inlined_call_operand.hbm [shape: f32[9,512], index: 2, kind: input, shape index: {}]   ;;  %s2644_s3 = inlined_call_operand.vmem [shape: f32[1,512], index: 3, kind: input, shape index: {}]   ;;  %s2645_s4 = inlined_call_operand.hbm [shape: f32[2,16,512], index: 4, kind: output, shape index: {}]  }
   0x1   :  { %2652 = sst [smem:[#allocation18_spill]] %s2641_s0 }
   0x2   :  { %2653 = sst [smem:[#allocation19_spill]] %s2643_s2 }
   0x3   :  { %9 = vsyncpa [#allocation4], 0 }
   0x4   :  { %11 = vsyncpa [#allocation4 + $0x1], 0 }
   0x5   :  { %12 = vsyncpa [#allocation7], 0 }
   0x6   :  { %14 = vsyncpa [#allocation7 + $0x1], 0 }
   0x7   :  { %15 = vsyncpa [#allocation5], 0 }
   0x8   :  { %17 = vsyncpa [#allocation5 + $0x1], 0  ;;  %s1832_s15 = smov 0   ;;  %s1834_s16 = smov 0  }
   0x9   :  { %s1836_s17 = smov 0   ;;  %s1838_s18 = smov 0  }
   0xa   :  { %s1840_s19 = smov 0   ;;  %s1842_s20 = smov 0  }
   0xb LB: > { %2654 = sst [smem:[#allocation14_spill]] %s1783_s17  ;;  %s1863_s21 = sadd.s32 4294967295, %s1795_s20   ;;  %s1795_s20 = sphi %s1842_s20, %s23_s20   ;;  %s1791_s19 = sphi %s1840_s19, %s2680_s19   ;;  %s1787_s18 = sphi %s1838_s18, %s2679_s18   ;;  %s1783_s17 = sphi %s1836_s17, %s2675_s17   ;;  %s1779_s16 = sphi %s1834_s16, %s2678_s16   ;;  %s1775_s15 = sphi %s1832_s15, %s2677_s15  }
   0xc   : > { %2655 = sst [smem:[#allocation15_spill]] %s1795_s20  ;;  %s1513_s22 = sadd.s32 4294967294, %s1795_s20  }
   0xd   : > { %p57_p0 = scmp.ne.s32.totalorder %s1779_s16, %s1775_s15  ;;  %p58_p1 = scmp.eq.s32.totalorder %s1863_s21, 0 }
   0xe   : > { %p159_p3 = scmp.eq.s32.totalorder %s1513_s22, 1  ;;  %p1514_p5 = scmp.ge.s32.totalorder %s1795_s20, 1 }
   0xf   : > { %p1872_p4 = por %p58_p1, %p57_p0  ;;  %p166_p7 = scmp.lt.s32.totalorder %s1795_s20, 3 }
  0x10   : > { %p1877_p6 = por %p159_p3, %p57_p0  ;;  %s1797_s26 = smov [#allocation8]  }
  0x11   : > { %p1882_p8 = pnand %p1514_p5, %p166_p7  ;;  %s178_s27 = sshll.u32 %s1797_s26, 4  ;;  %s179_s27 = int_to_ptr.vmem [resolvable:$true] %s178_s27 }
  0x12   : > { %s2657_s24 = scalar_select %p1877_p6, 1, 0 }
  0x13   : > { %p1547_p9 = pneg %p1882_p8  ;;  %p1516_p10 = scmp.ge.s32.totalorder %s1795_s20, 2 }
  0x14   : > { %s35_s29 = sadd.s32 1, %s1791_s19  ;;  %s1636_s30 = scalar_lea.vmem %s179_s27, 1024 }
  0x15   : > { %p1891_p11 = pnand %p1547_p9, %p58_p1  ;;  %p1637_p13 = scmp.ne.s32.totalorder %s179_s27, %s1636_s30 }
  0x16   : > { %p1644_p5 = scmp.lt.s32.totalorder %s179_s27, %s179_s27  ;;  %p1645_p7 = scmp.lt.s32.totalorder %s1636_s30, %s1636_s30 }
  0x17   : > { %p1627_p12 = pneg %p1891_p11 }
  0x18   : > { %p1646_p2 = por %p1645_p7, %p1644_p5 }
  0x19   : > { %p1639_p0 = pnand %p1637_p13, %p1627_p12 }
  0x1b   : > { %p1640_p3 = pneg %p1639_p0 }
  0x1d   : > { %p1647_p6 = pnand %p1646_p2, %p1640_p3 }
  0x1f   : > { %1650 = shalt.err (!%p1647_p6)
}
  0x20   : > { %s2646_s5 = smov 512   ;;  %s2647_s6 = smov 32  }
  0x21   : > { %s2660_s2 = sld [smem:[#allocation19_spill]]  ;;  %p37_p2 = scmp.ge.s32.totalorder %s35_s29, 2 }
  0x22   : > { %s44_s9 = sadd.s32 1, %s1783_s17  ;;  %p51_p6 = scmp.ne.s32.totalorder %s1783_s17, %s1779_s16 }
  0x23   : > { %p52_p9 = scmp.eq.s32.totalorder %s1795_s20, 0  ;;  %s2682_s29 = smov (%p37_p2, %s35_s29), 0 }
  0x24   : > { %2661 = sst [smem:[#allocation16_spill]] %s2682_s29  ;;  %p2663_p13 = scmp.eq.s32.totalorder %s1863_s21, 1 }
  0x25   : > { %p1912_p12 = por %p52_p9, %p51_p6  ;;  %s39_s12 = ssub.s32 %s1791_s19, %s2682_s29 }
  0x26   : > { %p1918_p0 = por %p2663_p13, %p51_p6  ;;  %p42_p3 = scmp.eq.s32.totalorder %s39_s12, 0 }
  0x27   : > { %1550 = dma.hbm_to_vmem [thread:$0]  (!%p1891_p11), %s2660_s2, 1024, %s179_s27, [#allocation7], %s2646_s5, %s2646_s5, %s2647_s6  }
  0x28   : > { %p1563_p11 = scmp.lt.s32.totalorder %s1795_s20, 2  ;;  %s1926_s13 = sand.u32 1, %s1783_s17  }
  0x29   : > { %s1517_s14 = sshll.u32 %s1926_s13, 6  ;;  %s1534_s26 = sshll.u32 %s1791_s19, 10 }
  0x2a   : > { %s1930_s22 = scalar_select %p42_p3, %s1783_s17, %s44_s9  }
  0x2b   : > { %s2666_s0 = sld [smem:[#allocation18_spill]]  ;;  %s199_s7 = scalar_lea.vmem [#allocation3], %s1517_s14 }
  0x2c   : > { %2665 = sst [smem:[#allocation17_spill]] %s1930_s22  ;;  %s209_s8 = sshll.u32 %s199_s7, 4  ;;  %s210_s8 = int_to_ptr.vmem [resolvable:$true] %s209_s8 }
  0x2d   : > { %p1938_p5 = pnand %p1563_p11, %p1912_p12  ;;  %s219_s12 = sand.u32 1, %s1795_s20  }
  0x2e   : > { %s1520_s6 = sshll.u32 %s1926_s13, 3  ;;  %s196_s2 = scalar_lea.sflag [#allocation4], %s1926_s13 }
  0x2f   : > { %p1653_p7 = pneg %p1938_p5  ;;  %s1664_s9 = scalar_lea.vmem %s210_s8, 1024 }
  0x30   : > { %p1665_p2 = scmp.ne.s32.totalorder %s210_s8, %s1664_s9  ;;  %s1800_s14 = smov [#allocation3]  }
  0x31   : > { %s208_s30 = scalar_lea.hbm %s2666_s0, %s1534_s26  ;;  %s1669_s26 = sshll.u32 %s1800_s14, 4  ;;  %s1670_s26 = int_to_ptr.vmem [resolvable:$false] %s1669_s26 }
  0x32   : > { %p1667_p6 = pnand %p1665_p2, %p1653_p7  ;;  %s1671_s10 = scalar_lea.vmem %s1670_s26, 2048 }
  0x33   : > { %p1672_p12 = scmp.lt.s32.totalorder %s210_s8, %s1670_s26  ;;  %p1673_p13 = scmp.lt.s32.totalorder %s1671_s10, %s1664_s9 }
  0x34   : > { %p1668_p9 = pneg %p1667_p6 }
  0x35   : > { %p1674_p11 = por %p1673_p13, %p1672_p12 }
  0x37   : > { %p1675_p3 = pnand %p1674_p11, %p1668_p9 }
  0x39   : > { %1678 = shalt.err (!%p1675_p3)
}
  0x3a   : > { %s2668_s13 = smov 32   ;;  %s2669_s27 = smov 512  }
  0x3b   : > { %1554 = dma.hbm_to_vmem [thread:$0]  (!%p1938_p5), %s208_s30, 1024, %s210_s8, %s196_s2, %s2669_s27, %s2669_s27, %s2668_s13  }
  0x3c   : > { %s1535_s28 = sshll.u32 %s1791_s19, 7  ;;  %s223_s29 = scalar_lea.vmem [#allocation6], %s1520_s6 }
  0x3d   : > { %s231_s14 = scalar_lea.hbm %s2642_s1, %s1535_s28  ;;  %s233_s22 = sshll.u32 %s223_s29, 4  ;;  %s234_s22 = int_to_ptr.vmem [resolvable:$true] %s233_s22 }
  0x3e   : > { %s220_s9 = scalar_lea.sflag [#allocation7], %s219_s12  ;;  %s1692_s26 = scalar_lea.vmem %s234_s22, 128 }
  0x3f   : > { %p1693_p2 = scmp.ne.s32.totalorder %s234_s22, %s1692_s26  ;;  %s1801_s10 = smov [#allocation6]  }
  0x40   : > { %s1697_s17 = sshll.u32 %s1801_s10, 4  ;;  %s1698_s17 = int_to_ptr.vmem [resolvable:$false] %s1697_s17 }
  0x41   : > { %p1695_p6 = pnand %p1693_p2, %p1653_p7  ;;  %s1699_s20 = scalar_lea.vmem %s1698_s17, 256 }
  0x42   : > { %p1700_p12 = scmp.lt.s32.totalorder %s234_s22, %s1698_s17  ;;  %p1701_p13 = scmp.lt.s32.totalorder %s1699_s20, %s1692_s26 }
  0x43   : > { %p1696_p9 = pneg %p1695_p6 }
  0x44   : > { %p1702_p11 = por %p1701_p13, %p1700_p12 }
  0x46   : > { %p1703_p3 = pnand %p1702_p11, %p1696_p9 }
  0x48   : > { %1706 = shalt.err (!%p1703_p3)
}
  0x49   : > { %1557 = dma.hbm_to_vmem [thread:$0]  (!%p1938_p5), %s231_s14, 128, %s234_s22, %s220_s9  }
  0x4a   : > { %242 = sbr.rel (%p1882_p8) target bundleno = 466 (0x1d2), region = 36  ;;  %s1967_s0 = sand.u32 (!%p1882_p8), 1, %s1779_s16  }
  0x4b   : > { %s1524_s2 = sshll.u32 (!%p1882_p8), %s1967_s0, 6  ;;  %s245_s29 = scalar_lea.sflag (!%p1882_p8), [#allocation4], %s1967_s0 }
  0x4c   : > { %s1973_s17 = scalar_lea.vmem (!%p1882_p8), [#allocation3], %s1524_s2 }
  0x4f   : > { %1758 = dma.done.wait (%p1872_p4), %s245_s29, 1024  }
  0x50   : > { %1760 = vsyncadd (%p1872_p4), %s245_s29, 4294966272  ;;  %s253_s20 = sand.u32 1, %s1863_s21   ;;  %s1525_s25 = sshll.u32 %s1967_s0, 3 }
  0x51   : > { %s254_s5 = scalar_lea.sflag [#allocation7], %s253_s20  ;;  %s1981_s6 = scalar_lea.vmem [#allocation6], %s1525_s25 }
  0x52   : > { %1762 = dma.done.wait (%p1872_p4), %s254_s5, 128  }
  0x53   : > { %1764 = vsyncadd (%p1872_p4), %s254_s5, 4294967168 }
  0x54   : > { %1766 = dma.done.wait (%p58_p1), [#allocation7], 1024  }
  0x55   : > { %1768 = vsyncadd (%p58_p1), [#allocation7], 4294966272  ;;  %v318_v0 = vlaneseq  ;;  %v1802_v1 = vmov 0.0   ;;  %v299_v7 = vld [vmem:[#allocation8] ss:$8 sm:$0xf] }
  0x56   : > { %293 = vst [vmem:[#allocation2] sm:$0xff] %v1802_v1  ;;  %295 = vst [vmem:[#allocation2 + $0x60] sm:$0x3] %v1802_v1  ;;  %s1803_s21 = smov 96   ;;  %v341_v14 = vld [vmem:[%s1973_s17 + $0x18] sm:$0xff]  ;;  %v338_v17 = vld [vmem:[%s1973_s17] sm:$0xff] }
  0x57   : > { %296 = vst [vmem:[#allocation2 + $0x28] sm:$0xff] %v1802_v1  ;;  %298 = vst [vmem:[#allocation2 + $0x88] sm:$0x3] %v1802_v1  ;;  %v319_v2 = vshrl.u32 %v318_v0, 7  ;;  %vm2001_vm0 = vcmp.lt.s32.totalorder %v318_v0, 512  ;;  %v345_v15 = vld [vmem:[%s1973_s17 + $0x38] sm:$0xff] }
  0x58   : > { %v303_v13 = vld [vmem:[#allocation8 + $0x2] ss:$8 sm:$0xf]  ;;  %vm354_vm1 = vcmask 1040384   ;;  %v358_v25 = vrot.slane %v341_v14, 7  ;;  %v365_v26 = vrot.slane %v345_v15, 7 }
  0x59   : > { %v1991_v3 = vsub.s32 2, %v319_v2  ;;  %v1993_v4 = vsub.s32 0, %v319_v2  ;;  %v1995_v5 = vsub.s32 3, %v319_v2  ;;  %v1997_v6 = vsub.s32 1, %v319_v2  ;;  %v339_v18 = vld [vmem:[%s1973_s17 + $0x8] sm:$0xff]  ;;  %v342_v19 = vld [vmem:[%s1973_s17 + $0x20] sm:$0xff] }
  0x5a   : > { %v391_v16 = vld [vmem:[%s1981_s6] ss:$2 sm:$0xf]  ;;  %v340_v22 = vld [vmem:[%s1973_s17 + $0x10] sm:$0xff]  ;;  %v355_v27 = vrot.slane %v338_v17, 7  ;;  %v356_v29 = vrot.slane %v339_v18, 7  ;;  %v2025_v32 = vsel %vm354_vm1, %v358_v25, %v365_v26 }
  0x5b   : > { %v426_v8 = vrot.slane %v299_v7, %v1991_v3  ;;  %v418_v9 = vrot.slane %v299_v7, %v1993_v4  ;;  %v430_v11 = vrot.slane %v299_v7, %v1995_v5  ;;  %v422_v12 = vrot.slane %v299_v7, %v1997_v6  ;;  %397 = vst.msk [vmem:[#allocation2 + $0x8] ss:$8 sm:$0xf] %vm2001_vm0, %v391_v16  ;;  %v343_v20 = vld [vmem:[%s1973_s17 + $0x28] sm:$0xff]  ;;  %v344_v23 = vld [vmem:[%s1973_s17 + $0x30] sm:$0xff]  ;;  %s1804_s23 = smov 32  }
  0x5c   : > { %v560_v21 = vrot.slane %v303_v13, %v1997_v6  ;;  %v556_v24 = vrot.slane %v303_v13, %v1993_v4  ;;  %v305_v28 = vld [vmem:[#allocation8 + $0x3] ss:$8 sm:$0xf]  ;;  %v359_v30 = vrot.slane %v342_v19, 7  ;;  %v361_v31 = vrot.slane %v343_v20, 7  ;;  %386 = vst [vmem:[#allocation2 + $0x50] sm:$0xff] %v2025_v32 }
  0x5d   : > { %435 = vrot.lane.b32.xlu1 %v426_v8, %s1803_s21  ;;  %431 = vrot.lane.b32.xlu0 %v418_v9, %s1803_s21  ;;  %382 = vst [vmem:[#allocation2 + $0x20] sm:$0xfe] %v358_v25  ;;  %390 = vst [vmem:[#allocation2 + $0x80] sm:$0x1] %v365_v26  ;;  %v357_v33 = vrot.slane %v340_v22, 7  ;;  %v363_v34 = vrot.slane %v344_v23, 7  ;;  %v667_v37 = vrot.slane %v305_v28, %v1997_v6 }
  0x5e   : > { %379 = vst [vmem:[#allocation2 + $0x8] sm:$0xfe] %v355_v27  ;;  %v2029_v35 = vsel %vm354_vm1, %v355_v27, %v359_v30  ;;  %v2032_v36 = vsel %vm354_vm1, %v356_v29, %v361_v31  ;;  %380 = vst [vmem:[#allocation2 + $0x10] sm:$0xfe] %v356_v29  ;;  %v663_v38 = vrot.slane %v305_v28, %v1993_v4  ;;  %vm439_vm2 = vcmask 785408   ;;  %s2543_s8 = scalar_lea.vmem [#allocation9], %s1524_s2 }
  0x5f   : > { %387 = vst [vmem:[#allocation2 + $0x68] sm:$0x1] %v359_v30  ;;  %388 = vst [vmem:[#allocation2 + $0x70] sm:$0x1] %v361_v31  ;;  %v2041_v39 = vsel %vm354_vm1, %v357_v33, %v363_v34  ;;  %v675_v40 = vrot.slane %v305_v28, %v1995_v5  ;;  %v671_v41 = vrot.slane %v305_v28, %v1991_v3  ;;  %vm488_vm3 = vcmask 261120   ;;  %s1390_s12 = sshll.u32 %s2543_s8, 4  ;;  %s2583_s12 = int_to_ptr.vmem [resolvable:$true] %s1390_s12 }
  0x60   : > { %383 = vst [vmem:[#allocation2 + $0x38] sm:$0xff] %v2029_v35  ;;  %384 = vst [vmem:[#allocation2 + $0x40] sm:$0xff] %v2032_v36  ;;  %v568_v42 = vrot.slane %v303_v13, %v1995_v5  ;;  %v564_v43 = vrot.slane %v303_v13, %v1991_v3  ;;  %v309_v44 = vld [vmem:[#allocation8 + $0x5] ss:$8 sm:$0xf]  ;;  %vm722_vm4 = vcmask 1046528  }
  0x61   : > { %437 = vrot.lane.b32.xlu1 %v430_v11, %s1803_s21  ;;  %433 = vrot.lane.b32.xlu0 %v422_v12, %s1803_s21  ;;  %381 = vst [vmem:[#allocation2 + $0x18] sm:$0xfe] %v357_v33  ;;  %389 = vst [vmem:[#allocation2 + $0x78] sm:$0x1] %v363_v34  ;;  %v879_v45 = vrot.slane %v309_v44, %v1993_v4  ;;  %v883_v46 = vrot.slane %v309_v44, %v1997_v6  ;;  %vm1080_vm5 = vcmask 1045504   ;;  %s1536_s13 = sshll.u32 %s1787_s18, 10 }
  0x62   : > { %385 = vst [vmem:[#allocation2 + $0x48] sm:$0xff] %v2041_v39  ;;  %v887_v47 = vrot.slane %v309_v44, %v1991_v3  ;;  %v891_v48 = vrot.slane %v309_v44, %v1995_v5  ;;  %v311_v49 = vld [vmem:[#allocation8 + $0x6] ss:$8 sm:$0xf]  ;;  %s2590_s18 = scalar_lea.hbm %s2645_s4, %s1536_s13  ;;  %s1374_s7 = scalar_lea.sflag [#allocation5], %s1967_s0 }
  0x63   : > { %v1025_v50 = vrot.slane %v311_v49, %v1997_v6  ;;  %v1021_v51 = vrot.slane %v311_v49, %v1993_v4  ;;  %v1029_v52 = vrot.slane %v311_v49, %v1991_v3  ;;  %v1033_v53 = vrot.slane %v311_v49, %v1995_v5  ;;  %v315_v54 = vld [vmem:[#allocation8 + $0x20] ss:$8 sm:$0xf]  ;;  %v1528_v59 = vld [vmem:[%s1981_s6 + $0x1] ss:$2 sm:$0xf] }
  0x64   : > { %v1237_v55 = vrot.slane %v315_v54, %v1993_v4  ;;  %v1241_v56 = vrot.slane %v315_v54, %v1997_v6  ;;  %v1245_v57 = vrot.slane %v315_v54, %v1991_v3  ;;  %v1249_v58 = vrot.slane %v315_v54, %v1995_v5  ;;  %402 = vst.msk [vmem:[#allocation2 + $0x69] ss:$8 sm:$0xf] %vm2001_vm0, %v1528_v59  ;;  %v2081_v63 = vld [vmem:[#allocation2 + $0x20] sm:$0xff]  ;;  %s1707_s14 = scalar_lea.vmem %s2583_s12, 1024  ;;  %s1805_s9 = smov [#allocation9]  }
  0x65   : > { %571 = vrot.lane.b32.xlu1 %v560_v21, %s1804_s23  ;;  %569 = vrot.lane.b32.xlu0 %v556_v24, %s1804_s23  ;;  %v2089_v8 = vld [vmem:[#allocation2 + $0x8] sm:$0xff]  ;;  %v2102_v19 = vld [vmem:[#allocation2 + $0x10] sm:$0xff]  ;;  %v2141_v49 = vld [vmem:[#allocation2 + $0x20] sm:$0xfe]  ;;  %p1708_p1 = scmp.ne.s32.totalorder %s2583_s12, %s1707_s14  ;;  %s1711_s26 = sshll.u32 %s1805_s9, 4  ;;  %s1712_s26 = int_to_ptr.vmem [resolvable:$false] %s1711_s26 }
  0x66   : > { %s1713_s10 = scalar_lea.vmem %s1712_s26, 2048  ;;  %p1714_p5 = scmp.lt.s32.totalorder %s2583_s12, %s1712_s26 }
  0x67   : > { %p1709_p4 = pnand %p1708_p1, %p1918_p0  ;;  %p1715_p7 = scmp.lt.s32.totalorder %s1713_s10, %s1707_s14 }
  0x68   : > { %v2112_v25 = vld [vmem:[#allocation2 + $0x18] sm:$0xff] }
  0x69   : > { %678 = vrot.lane.b32.xlu1 %v667_v37, %s1803_s21  ;;  %676 = vrot.lane.b32.xlu0 %v663_v38, %s1803_s21  ;;  %p1710_p8 = pneg %p1709_p4  ;;  %p1716_p2 = por %p1715_p7, %p1714_p5 }
  0x6b   : > { %p1717_p6 = pnand %p1716_p2, %p1710_p8 }
  0x6d   : > { %682 = vrot.lane.b32.xlu1 %v675_v40, %s1803_s21  ;;  %680 = vrot.lane.b32.xlu0 %v671_v41, %s1803_s21  ;;  %v654_v40 = vld [vmem:[#allocation2 + $0x60] sm:$0x1]  ;;  %v649_v41 = vld [vmem:[#allocation2] sm:$0xfe] }
  0x71   : > { %575 = vrot.lane.b32.xlu1 %v568_v42, %s1804_s23  ;;  %573 = vrot.lane.b32.xlu0 %v564_v43, %s1804_s23 }
  0x75   : > { %892 = vrot.lane.b32.xlu0 %v879_v45, %s1804_s23  ;;  %894 = vrot.lane.b32.xlu1 %v883_v46, %s1804_s23 }
  0x79   : > { %896 = vrot.lane.b32.xlu0 %v887_v47, %s1804_s23  ;;  %898 = vrot.lane.b32.xlu1 %v891_v48, %s1804_s23  ;;  %v2136_v47 = vld [vmem:[#allocation2 + $0x80] sm:$0x1] }
  0x7d   : > { %1036 = vrot.lane.b32.xlu1 %v1025_v50, %s1803_s21  ;;  %1034 = vrot.lane.b32.xlu0 %v1021_v51, %s1803_s21 }
  0x81   : > { %1038 = vrot.lane.b32.xlu0 %v1029_v52, %s1803_s21  ;;  %1040 = vrot.lane.b32.xlu1 %v1033_v53, %s1803_s21 }
  0x85   : > { %1250 = vrot.lane.b32.xlu0 %v1237_v55, %s1804_s23  ;;  %1252 = vrot.lane.b32.xlu1 %v1241_v56, %s1804_s23 }
  0x89   : > { %1254 = vrot.lane.b32.xlu0 %v1245_v57, %s1804_s23  ;;  %1256 = vrot.lane.b32.xlu1 %v1249_v58, %s1804_s23  ;;  %v2155_v58 = vld [vmem:[#allocation2 + $0x68] sm:$0x1] }
  0xcf   : > { %v436_v60 = vpop.permute.xlu1 %435  ;;  %v432_v61 = vpop.permute.xlu0 %431 }
  0xd0   : > { %v448_v62 = vmul.f32 0.0, %v432_v61 }
  0xd2   : > { %478 = vrot.lane.b32.xlu1 %v448_v62, %s1804_s23  ;;  %468 = vrot.lane.b32.xlu0 %v448_v62, %s1804_s23 }
  0xd3   : > { %v438_v0 = vpop.permute.xlu1 %437  ;;  %v434_v1 = vpop.permute.xlu0 %433 }
  0xd4   : > { %v452_v2 = vmul.f32 %v438_v0, %v2081_v63  ;;  %v457_v7 = vmul.f32 %v438_v0, %v2025_v32  ;;  %v440_v18 = vsel %vm439_vm2, %v432_v61, %v434_v1  ;;  %v441_v20 = vsel %vm439_vm2, %v434_v1, %v436_v60 }
  0xd5   : > { %v449_v21 = vmul.f32 %v440_v18, %v2089_v8  ;;  %v442_v22 = vsel %vm439_vm2, %v436_v60, %v438_v0  ;;  %v450_v23 = vmul.f32 %v441_v20, %v2102_v19  ;;  %v454_v27 = vmul.f32 %v440_v18, %v2029_v35  ;;  %v2158_v60 = vld [vmem:[#allocation2 + $0x8] sm:$0xfe] }
  0xd6   : > { %486 = vrot.lane.b32.xlu1 %v457_v7, %s1804_s23  ;;  %476 = vrot.lane.b32.xlu0 %v452_v2, %s1804_s23  ;;  %v451_v26 = vmul.f32 %v442_v22, %v2112_v25  ;;  %v455_v29 = vmul.f32 %v441_v20, %v2032_v36  ;;  %v456_v31 = vmul.f32 %v442_v22, %v2041_v39  ;;  %v874_v2 = vld [vmem:[#allocation2 + $0x88] sm:$0x1] }
  0xd7   : > { %v572_v9 = vpop.permute.xlu1 %571  ;;  %v570_v10 = vpop.permute.xlu0 %569 }
  0xd8   : > { %v585_v11 = vmul.f32 %v570_v10, %v2089_v8  ;;  %v590_v12 = vmul.f32 %v570_v10, %v2029_v35  ;;  %v577_v30 = vsel %vm488_vm3, %v570_v10, %v572_v9 }
  0xd9   : > { %v586_v34 = vmul.f32 %v577_v30, %v2102_v19  ;;  %v591_v45 = vmul.f32 %v577_v30, %v2032_v36 }
  0xda   : > { %615 = vrot.lane.b32.xlu1 %v590_v12, %s1803_s21  ;;  %605 = vrot.lane.b32.xlu0 %v585_v11, %s1803_s21  ;;  %v873_v12 = vld [vmem:[#allocation2 + $0x28] sm:$0xfe] }
  0xdb   : > { %v2095_v13 = vpop.permute.xlu1 %678  ;;  %v2099_v15 = vpop.permute.xlu0 %676 }
  0xdc   : > { %v697_v42 = vmul.f32 0.0, %v2099_v15  ;;  %v702_v44 = vmul.f32 %v2099_v15, %v654_v40  ;;  %v692_v46 = vmul.f32 %v2099_v15, %v649_v41  ;;  %v684_v30 = vsel %vm439_vm2, %v2099_v15, %v2095_v13 }
  0xdd   : > { %v693_v15 = vmul.f32 %v684_v30, %v2158_v60 }
  0xde   : > { %v724_v52 = vrot.slane %v697_v42, 1  ;;  %v738_v56 = vrot.slane %v702_v44, 1  ;;  %v723_v59 = vrot.slane %v692_v46, 1  ;;  %v2194_v44 = vld [vmem:[#allocation2 + $0x18] sm:$0xfe] }
  0xdf   : > { %v2097_v14 = vpop.permute.xlu1 %682  ;;  %v2110_v24 = vpop.permute.xlu0 %680  ;;  %v2200_v46 = vld [vmem:[#allocation2 + $0x10] sm:$0xfe] }
  0xe0   : > { %v701_v53 = vmul.f32 %v2097_v14, %v2025_v32  ;;  %v706_v54 = vmul.f32 %v2097_v14, %v2136_v47  ;;  %v696_v57 = vmul.f32 %v2097_v14, %v2141_v49  ;;  %v739_v7 = vsel %vm722_vm4, %v724_v52, %v738_v56  ;;  %v2209_v56 = vld [vmem:[#allocation2 + $0x70] sm:$0x1] }
  0xe2   : > { %v736_v10 = vrot.slane %v701_v53, 1  ;;  %v746_v11 = vrot.slane %v706_v54, 1 }
  0xe3   : > { %v576_v16 = vpop.permute.xlu1 %575  ;;  %v574_v28 = vpop.permute.xlu0 %573 }
  0xe4   : > { %v589_v17 = vmul.f32 0.0, %v576_v16  ;;  %v578_v33 = vsel %vm488_vm3, %v572_v9, %v574_v28  ;;  %v579_v37 = vsel %vm488_vm3, %v574_v28, %v576_v16  ;;  %v725_v16 = vsel %vm722_vm4, %v723_v59, %v724_v52 }
  0xe5   : > { %v587_v38 = vmul.f32 %v578_v33, %v2112_v25  ;;  %v588_v43 = vmul.f32 %v579_v37, %v2081_v63  ;;  %v592_v51 = vmul.f32 %v578_v33, %v2041_v39  ;;  %v593_v55 = vmul.f32 %v579_v37, %v2025_v32 }
  0xe6   : > { %623 = vrot.lane.b32.xlu1 %v589_v17, %s1803_s21  ;;  %613 = vrot.lane.b32.xlu0 %v589_v17, %s1803_s21  ;;  %v735_v17 = vrot.slane %v696_v57, 1  ;;  %v726_v59 = vrot.slane %v693_v15, 1 }
  0xe7   : > { %v2139_v48 = vpop.permute.xlu1 %894  ;;  %v2144_v50 = vpop.permute.xlu0 %892 }
  0xe8   : > { %v913_v61 = vmul.f32 %v2144_v50, %v2029_v35  ;;  %v918_v62 = vmul.f32 %v2144_v50, %v2155_v58  ;;  %v908_v0 = vmul.f32 %v2144_v50, %v2158_v60 }
  0xea   : > { %470 = vrot.lane.b32.xlu1 %v449_v21, %s1804_s23  ;;  %472 = vrot.lane.b32.xlu0 %v450_v23, %s1804_s23  ;;  %v939_v21 = vrot.slane %v913_v61, 1  ;;  %v953_v22 = vrot.slane %v918_v62, 1 }
  0xeb   : > { %v2166_v1 = vpop.permute.xlu1 %898  ;;  %v2169_v9 = vpop.permute.xlu0 %896 }
  0xec   : > { %v917_v18 = vmul.f32 0.0, %v2166_v1  ;;  %v922_v20 = vmul.f32 %v2166_v1, %v874_v2  ;;  %v912_v23 = vmul.f32 %v2166_v1, %v873_v12  ;;  %v954_v33 = vsel %vm722_vm4, %v939_v21, %v953_v22 }
  0xee   : > { %474 = vrot.lane.b32.xlu1 %v451_v26, %s1804_s23  ;;  %480 = vrot.lane.b32.xlu0 %v454_v27, %s1804_s23  ;;  %v938_v26 = vrot.slane %v908_v0, 1  ;;  %v747_v27 = vsel %vm722_vm4, %v736_v10, %v746_v11  ;;  %v961_v37 = vrot.slane %v922_v20, 1  ;;  %v950_v42 = vrot.slane %v912_v23, 1 }
  0xef   : > { %v2178_v28 = vpop.permute.xlu0 %1034 }
  0xf0   : > { %v2190_v41 = vmul.f32 0.0, %v2178_v28 }
  0xf2   : > { %482 = vrot.lane.b32.xlu1 %v455_v29, %s1804_s23  ;;  %484 = vrot.lane.b32.xlu0 %v456_v31, %s1804_s23  ;;  %v1007_v29 = vld [vmem:[#allocation2] sm:$0xfc]  ;;  %v737_v31 = vsel %vm722_vm4, %v735_v17, %v736_v10  ;;  %v900_v10 = vsel %vm488_vm3, %v2144_v50, %v2139_v48  ;;  %v703_v17 = vmul.f32 %v684_v30, %v2155_v58 }
  0xf3   : > { %v1050_v40 = vmul.f32 %v2178_v28, %v1007_v29  ;;  %v909_v20 = vmul.f32 %v900_v10, %v2200_v46  ;;  %v914_v22 = vmul.f32 %v900_v10, %v2032_v36 }
  0xf4   : > { %v740_v29 = vrot.slane %v703_v17, 1  ;;  %v2276_v17 = vld [vmem:[#allocation2 + $0x10] sm:$0xfc] }
  0xf5   : > { %v1081_v54 = vrot.slane %v1050_v40, 2 }
  0xf6   : > { %607 = vrot.lane.b32.xlu1 %v586_v34, %s1803_s21  ;;  %609 = vrot.lane.b32.xlu0 %v587_v38, %s1803_s21  ;;  %v951_v34 = vrot.slane %v917_v18, 1  ;;  %v940_v38 = vsel %vm722_vm4, %v938_v26, %v939_v21  ;;  %v2227_v18 = vld [vmem:[#allocation2 + $0x78] sm:$0x1]  ;;  %v902_v26 = vsel %vm488_vm3, %v2169_v9, %v2166_v1 }
  0xf7   : > { %v916_v1 = vmul.f32 %v902_v26, %v2025_v32 }
  0xf8   : > { %v962_v52 = vsel %vm722_vm4, %v951_v34, %v961_v37  ;;  %v952_v53 = vsel %vm722_vm4, %v950_v42, %v951_v34  ;;  %v1037_v34 = vpop.permute.xlu1 %1036 }
  0xfa   : > { %611 = vrot.lane.b32.xlu1 %v588_v43, %s1803_s21  ;;  %617 = vrot.lane.b32.xlu0 %v591_v45, %s1803_s21  ;;  %v698_v43 = vmul.f32 %v684_v30, %v2029_v35  ;;  %v686_v45 = vsel %vm439_vm2, %v2110_v24, %v2097_v14  ;;  %v901_v30 = vsel %vm488_vm3, %v2139_v48, %v2169_v9 }
  0xfb   : > { %v695_v14 = vmul.f32 %v686_v45, %v2194_v44  ;;  %v700_v57 = vmul.f32 %v686_v45, %v2041_v39  ;;  %v705_v50 = vmul.f32 %v686_v45, %v2227_v18  ;;  %v910_v42 = vmul.f32 %v901_v30, %v2194_v44 }
  0xfc   : > { %v727_v61 = vrot.slane %v698_v43, 1  ;;  %v915_v15 = vmul.f32 %v901_v30, %v2041_v39  ;;  %v919_v9 = vmul.f32 %v900_v10, %v2209_v56  ;;  %v920_v43 = vmul.f32 %v901_v30, %v2227_v18 }
  0xfd   : > { %v732_v2 = vrot.slane %v695_v14, 1  ;;  %v744_v40 = vrot.slane %v705_v50, 1 }
  0xfe   : > { %619 = vrot.lane.b32.xlu1 %v592_v51, %s1803_s21  ;;  %621 = vrot.lane.b32.xlu0 %v593_v55, %s1803_s21  ;;  %v685_v51 = vsel %vm439_vm2, %v2095_v13, %v2110_v24  ;;  %v1082_v55 = vrot.slane %v2190_v41, 2  ;;  %v728_v11 = vsel %vm722_vm4, %v726_v59, %v727_v61  ;;  %v741_v48 = vsel %vm722_vm4, %v727_v61, %v740_v29  ;;  %v2260_v61 = vld [vmem:[#allocation2 + $0x8] sm:$0xfc]  ;;  %v1012_v29 = vld [vmem:[#allocation2 + $0x60] sm:$0x3] }
  0xff   : > { %v694_v13 = vmul.f32 %v685_v51, %v2200_v46  ;;  %v699_v24 = vmul.f32 %v685_v51, %v2032_v36  ;;  %v704_v62 = vmul.f32 %v685_v51, %v2209_v56  ;;  %v945_v14 = vrot.slane %v915_v15, 1 }
 0x100   : > { %v1083_v0 = vsel %vm1080_vm5, %v1081_v54, %v1082_v55  ;;  %v944_v54 = vrot.slane %v910_v42, 1 }
 0x101   : > { %v729_v12 = vrot.slane %v694_v13, 1  ;;  %v742_v21 = vrot.slane %v704_v62, 1  ;;  %v1039_v13 = vpop.permute.xlu0 %1038  ;;  %v2265_v62 = vld [vmem:[#allocation2 + $0x18] sm:$0xfc] }
 0x102   : > { %758 = vrot.lane.b32.xlu1 %v739_v7, %s1804_s23  ;;  %748 = vrot.lane.b32.xlu0 %v725_v16, %s1804_s23  ;;  %v733_v7 = vrot.slane %v700_v57, 1  ;;  %v730_v16 = vrot.slane %v699_v24, 1  ;;  %v1042_v57 = vsel %vm439_vm2, %v2178_v28, %v1037_v34 }
 0x103   : > { %v1051_v10 = vmul.f32 %v1042_v57, %v2260_v61 }
 0x104   : > { %v734_v23 = vsel %vm722_vm4, %v732_v2, %v733_v7  ;;  %v743_v37 = vsel %vm722_vm4, %v730_v16, %v742_v21  ;;  %v745_v59 = vsel %vm722_vm4, %v733_v7, %v744_v40  ;;  %v946_v7 = vsel %vm722_vm4, %v944_v54, %v945_v14 }
 0x105   : > { %v1084_v50 = vrot.slane %v1051_v10, 2  ;;  %v1060_v40 = vmul.f32 %v2178_v28, %v1012_v29 }
 0x106   : > { %766 = vrot.lane.b32.xlu1 %v747_v27, %s1804_s23  ;;  %756 = vrot.lane.b32.xlu0 %v737_v31, %s1804_s23  ;;  %v731_v27 = vsel %vm722_vm4, %v729_v12, %v730_v16  ;;  %v941_v31 = vrot.slane %v909_v20, 1  ;;  %v955_v12 = vrot.slane %v919_v9, 1  ;;  %v921_v16 = vmul.f32 %v902_v26, %v2136_v47 }
 0x107   : > { %v1043_v20 = vsel %vm439_vm2, %v1037_v34, %v1039_v13  ;;  %v2289_v34 = vld [vmem:[#allocation2 + $0x20] sm:$0xfc] }
 0x108   : > { %v1052_v30 = vmul.f32 %v1043_v20, %v2276_v17 }
 0x10a   : > { %973 = vrot.lane.b32.xlu1 %v954_v33, %s1803_s21  ;;  %963 = vrot.lane.b32.xlu0 %v940_v38, %s1803_s21  ;;  %v942_v33 = vrot.slane %v914_v22, 1  ;;  %v911_v38 = vmul.f32 %v902_v26, %v2141_v49  ;;  %v1057_v26 = vmul.f32 %v1043_v20, %v2032_v36  ;;  %v1087_v9 = vrot.slane %v1052_v30, 2 }
 0x10c   : > { %v943_v45 = vsel %vm722_vm4, %v941_v31, %v942_v33  ;;  %v947_v51 = vrot.slane %v911_v38, 1  ;;  %v956_v31 = vsel %vm722_vm4, %v942_v33, %v955_v12  ;;  %v2314_v12 = vld [vmem:[#allocation2 + $0x78] sm:$0x3] }
 0x10e   : > { %981 = vrot.lane.b32.xlu1 %v962_v52, %s1803_s21  ;;  %971 = vrot.lane.b32.xlu0 %v952_v53, %s1803_s21  ;;  %v948_v52 = vrot.slane %v916_v1, 1  ;;  %v2254_v53 = vpop.permute.xlu1 %1040 }
 0x10f   : > { %v1044_v24 = vsel %vm439_vm2, %v1039_v13, %v2254_v53  ;;  %v1054_v42 = vmul.f32 %v2254_v53, %v2289_v34  ;;  %v1059_v33 = vmul.f32 %v2254_v53, %v2025_v32  ;;  %v1251_v13 = vpop.permute.xlu0 %1250 }
 0x110   : > { %v949_v2 = vsel %vm722_vm4, %v947_v51, %v948_v52  ;;  %v1053_v21 = vmul.f32 %v1044_v24, %v2265_v62  ;;  %v2281_v22 = vmul.f32 %v1044_v24, %v2041_v39  ;;  %v2305_v51 = vld [vmem:[#allocation2 + $0x68] sm:$0x3]  ;;  %v1271_v41 = vmul.f32 %v1251_v13, %v2029_v35 }
 0x111   : > { %v1093_v10 = vrot.slane %v1054_v42, 2 }
 0x112   : > { %750 = vrot.lane.b32.xlu1 %v728_v11, %s1804_s23  ;;  %1106 = vrot.lane.b32.xlu0 %v1083_v0, %s1804_s23  ;;  %v957_v0 = vrot.slane %v920_v43, 1  ;;  %v2270_v11 = vmul.f32 %v1042_v57, %v2029_v35  ;;  %v1090_v38 = vrot.slane %v1053_v21, 2  ;;  %v1091_v1 = vrot.slane %v2281_v22, 2  ;;  %v1253_v54 = vpop.permute.xlu1 %1252 }
 0x113   : > { %v1088_v43 = vrot.slane %v1057_v26, 2  ;;  %v1255_v26 = vpop.permute.xlu0 %1254 }
 0x114   : > { %v1092_v28 = vsel %vm1080_vm5, %v1090_v38, %v1091_v1  ;;  %v1259_v38 = vsel %vm488_vm3, %v1253_v54, %v1255_v26 }
 0x116   : > { %754 = vrot.lane.b32.xlu1 %v734_v23, %s1804_s23  ;;  %752 = vrot.lane.b32.xlu0 %v731_v27, %s1804_s23  ;;  %v958_v23 = vsel %vm722_vm4, %v945_v14, %v957_v0  ;;  %v1085_v27 = vrot.slane %v2270_v11, 2  ;;  %v2308_v0 = vld [vmem:[#allocation2 + $0x80] sm:$0x3]  ;;  %v1094_v11 = vrot.slane %v1059_v33, 2  ;;  %v1257_v22 = vpop.permute.xlu1 %1256 }
 0x118   : > { %v1086_v15 = vsel %vm1080_vm5, %v1084_v50, %v1085_v27  ;;  %v1063_v50 = vmul.f32 %v1044_v24, %v2314_v12 }
 0x11a   : > { %762 = vrot.lane.b32.xlu1 %v743_v37, %s1804_s23  ;;  %760 = vrot.lane.b32.xlu0 %v741_v48, %s1804_s23  ;;  %v959_v37 = vrot.slane %v921_v16, 1  ;;  %v2297_v48 = vld [vmem:[#allocation2 + $0x70] sm:$0x3] }
 0x11b   : > { %v1062_v14 = vmul.f32 %v1043_v20, %v2297_v48  ;;  %v1064_v20 = vmul.f32 %v2254_v53, %v2308_v0  ;;  %v1266_v53 = vmul.f32 %v1251_v13, %v2260_v61 }
 0x11d   : > { %v1100_v16 = vrot.slane %v1062_v14, 2  ;;  %v1268_v14 = vmul.f32 %v1259_v38, %v2265_v62 }
 0x11e   : > { %965 = vrot.lane.b32.xlu1 %v943_v45, %s1803_s21  ;;  %764 = vrot.lane.b32.xlu0 %v745_v59, %s1804_s23  ;;  %v960_v45 = vsel %vm722_vm4, %v948_v52, %v959_v37  ;;  %v1096_v59 = vrot.slane %v1060_v40, 2  ;;  %v1061_v52 = vmul.f32 %v1042_v57, %v2305_v51  ;;  %v1104_v37 = vrot.slane %v1064_v20, 2 }
 0x11f   : > { %v1102_v40 = vrot.slane %v1063_v50, 2  ;;  %v1276_v20 = vmul.f32 %v1251_v13, %v2305_v51  ;;  %v1278_v50 = vmul.f32 %v1259_v38, %v2314_v12 }
 0x120   : > { %v1097_v21 = vsel %vm1080_vm5, %v1082_v55, %v1096_v59  ;;  %v1098_v57 = vrot.slane %v1061_v52, 2  ;;  %v1260_v55 = vsel %vm488_vm3, %v1255_v26, %v1257_v22  ;;  %v1273_v59 = vmul.f32 %v1259_v38, %v2041_v39  ;;  %v1232_v26 = vld [vmem:[#allocation2 + $0x88] sm:$0x3] }
 0x121   : > { %v1274_v33 = vmul.f32 %v1260_v55, %v2025_v32 }
 0x122   : > { %969 = vrot.lane.b32.xlu1 %v949_v2, %s1803_s21  ;;  %967 = vrot.lane.b32.xlu0 %v946_v7, %s1803_s21  ;;  %v1089_v2 = vsel %vm1080_vm5, %v1087_v9, %v1088_v43  ;;  %v1258_v7 = vsel %vm488_vm3, %v1251_v13, %v1253_v54  ;;  %v1099_v24 = vsel %vm1080_vm5, %v1085_v27, %v1098_v57  ;;  %v1231_v54 = vld [vmem:[#allocation2 + $0x28] sm:$0xfc]  ;;  %v1275_v57 = vmul.f32 0.0, %v1257_v22 }
 0x123   : > { %v1267_v29 = vmul.f32 %v1258_v7, %v2276_v17  ;;  %v1272_v30 = vmul.f32 %v1258_v7, %v2032_v36  ;;  %v1269_v9 = vmul.f32 %v1260_v55, %v2289_v34  ;;  %v1103_v27 = vsel %vm1080_vm5, %v1091_v1, %v1102_v40 }
 0x124   : > { %v1306_v52 = vrot.slane %v1274_v33, 2 }
 0x125   : > { %v1299_v42 = vrot.slane %v1267_v29, 2  ;;  %v1311_v29 = vrot.slane %v1276_v20, 2 }
 0x126   : > { %977 = vrot.lane.b32.xlu1 %v958_v23, %s1803_s21  ;;  %975 = vrot.lane.b32.xlu0 %v956_v31, %s1803_s21  ;;  %v1095_v23 = vsel %vm1080_vm5, %v1093_v10, %v1094_v11  ;;  %v1101_v31 = vsel %vm1080_vm5, %v1088_v43, %v1100_v16  ;;  %v1105_v43 = vsel %vm1080_vm5, %v1094_v11, %v1104_v37  ;;  %v1305_v10 = vrot.slane %v1269_v9, 2 }
 0x127   : > { %v1302_v11 = vrot.slane %v1268_v14, 2  ;;  %v1280_v37 = vmul.f32 %v1257_v22, %v1232_v26 }
 0x128   : > { %v1307_v1 = vsel %vm1080_vm5, %v1305_v10, %v1306_v52 }
 0x12a   : > { %1108 = vrot.lane.b32.xlu1 %v1086_v15, %s1804_s23  ;;  %979 = vrot.lane.b32.xlu0 %v960_v45, %s1803_s21  ;;  %v1300_v15 = vrot.slane %v1272_v30, 2  ;;  %v1296_v45 = vrot.slane %v1266_v53, 2  ;;  %v1277_v30 = vmul.f32 %v1258_v7, %v2297_v48  ;;  %v1279_v7 = vmul.f32 %v1260_v55, %v2308_v0 }
 0x12c   : > { %v1313_v40 = vrot.slane %v1277_v30, 2 }
 0x12e   : > { %1112 = vrot.lane.b32.xlu1 %v1092_v28, %s1804_s23  ;;  %1110 = vrot.lane.b32.xlu0 %v1089_v2, %s1804_s23  ;;  %v1297_v28 = vrot.slane %v1271_v41, 2  ;;  %v1301_v2 = vsel %vm1080_vm5, %v1299_v42, %v1300_v15  ;;  %v1309_v41 = vrot.slane %v1275_v57, 2 }
 0x130   : > { %v1298_v16 = vsel %vm1080_vm5, %v1296_v45, %v1297_v28  ;;  %v1319_v45 = vrot.slane %v1280_v37, 2 }
 0x132   : > { %1116 = vrot.lane.b32.xlu1 %v1097_v21, %s1804_s23  ;;  %1114 = vrot.lane.b32.xlu0 %v1095_v23, %s1804_s23  ;;  %v1303_v21 = vrot.slane %v1273_v59, 2  ;;  %v1270_v23 = vmul.f32 %v1257_v22, %v1231_v54  ;;  %v1314_v22 = vsel %vm1080_vm5, %v1300_v15, %v1313_v40  ;;  %v316_v15 = vld [vmem:[%s2644_s3] sm:$0xf] }
 0x134   : > { %v1304_v13 = vsel %vm1080_vm5, %v1302_v11, %v1303_v21  ;;  %v1308_v53 = vrot.slane %v1270_v23, 2 }
 0x136   : > { %1120 = vrot.lane.b32.xlu1 %v1101_v31, %s1804_s23  ;;  %1118 = vrot.lane.b32.xlu0 %v1099_v24, %s1804_s23  ;;  %v1315_v31 = vrot.slane %v1278_v50, 2  ;;  %v1312_v24 = vsel %vm1080_vm5, %v1297_v28, %v1311_v29  ;;  %v1310_v38 = vsel %vm1080_vm5, %v1308_v53, %v1309_v41  ;;  %v1320_v28 = vsel %vm1080_vm5, %v1309_v41, %v1319_v45 }
 0x137   : > { %v329_v41 = vrot.slane %v316_v15, %v1991_v3 }
 0x138   : > { %v1316_v33 = vsel %vm1080_vm5, %v1303_v21, %v1315_v31  ;;  %v321_v21 = vrot.slane %v316_v15, %v1993_v4  ;;  %v333_v31 = vrot.slane %v316_v15, %v1995_v5 }
 0x13a   : > { %1124 = vrot.lane.b32.xlu1 %v1105_v43, %s1804_s23  ;;  %1122 = vrot.lane.b32.xlu0 %v1103_v27, %s1804_s23  ;;  %v1317_v43 = vrot.slane %v1279_v7, 2 }
 0x13c   : > { %v1318_v55 = vsel %vm1080_vm5, %v1306_v52, %v1317_v43  ;;  %v325_v52 = vrot.slane %v316_v15, %v1997_v6 }
 0x13e   : > { %1323 = vrot.lane.b32.xlu1 %v1301_v2, %s1803_s21  ;;  %1321 = vrot.lane.b32.xlu0 %v1298_v16, %s1803_s21  ;;  %v301_v2 = vld [vmem:[#allocation8 + $0x1] ss:$8 sm:$0xf] }
 0x13f   : > { %v517_v16 = vrot.slane %v301_v2, %v1993_v4  ;;  %v521_v11 = vrot.slane %v301_v2, %v1997_v6  ;;  %v529_v50 = vrot.slane %v301_v2, %v1995_v5 }
 0x141   : > { %v534_v57 = vmul.f32 %v517_v16, %v2089_v8  ;;  %v535_v26 = vmul.f32 %v521_v11, %v2102_v19 }
 0x142   : > { %1327 = vrot.lane.b32.xlu1 %v1307_v1, %s1803_s21  ;;  %1325 = vrot.lane.b32.xlu0 %v1304_v13, %s1803_s21  ;;  %v525_v1 = vrot.slane %v301_v2, %v1991_v3 }
 0x144   : > { %v479_v42 = vpop.permute.xlu1 %478  ;;  %v469_v9 = vpop.permute.xlu0 %468  ;;  %v536_v8 = vmul.f32 %v525_v1, %v2112_v25 }
 0x146   : > { %1331 = vrot.lane.b32.xlu1 %v1312_v24, %s1803_s21  ;;  %1329 = vrot.lane.b32.xlu0 %v1310_v38, %s1803_s21  ;;  %v537_v38 = vmul.f32 %v529_v50, %v2081_v63 }
 0x148   : > { %v487_v14 = vpop.permute.xlu1 %486  ;;  %v477_v59 = vpop.permute.xlu0 %476 }
 0x14a   : > { %1335 = vrot.lane.b32.xlu1 %v1316_v33, %s1803_s21  ;;  %1333 = vrot.lane.b32.xlu0 %v1314_v22, %s1803_s21 }
 0x14c   : > { %v616_v27 = vpop.permute.xlu1 %615  ;;  %v606_v54 = vpop.permute.xlu0 %605 }
 0x14e   : > { %1339 = vrot.lane.b32.xlu1 %v1320_v28, %s1803_s21  ;;  %1337 = vrot.lane.b32.xlu0 %v1318_v55, %s1803_s21 }
 0x158   : > { %v2371_v10 = vpop.permute.xlu1 %623  ;;  %v614_v20 = vpop.permute.xlu0 %613 }
 0x15c   : > { %v471_v23 = vpop.permute.xlu1 %470  ;;  %v473_v30 = vpop.permute.xlu0 %472 }
 0x15d   : > { %v489_v29 = vsel %vm488_vm3, %v469_v9, %v471_v23  ;;  %v490_v53 = vsel %vm488_vm3, %v471_v23, %v473_v30 }
 0x15e   : > { %v505_v13 = vadd.f32 %v489_v29, %v321_v21  ;;  %v506_v37 = vadd.f32 %v490_v53, %v325_v52 }
 0x160   : > { %v475_v24 = vpop.permute.xlu1 %474  ;;  %v542_v40 = vadd.f32 %v534_v57, %v505_v13  ;;  %v481_v33 = vpop.permute.xlu0 %480  ;;  %v543_v19 = vadd.f32 %v535_v26, %v506_v37  ;;  %v539_v37 = vmul.f32 %v521_v11, %v2032_v36 }
 0x161   : > { %v491_v7 = vsel %vm488_vm3, %v473_v30, %v475_v24  ;;  %v492_v9 = vsel %vm488_vm3, %v475_v24, %v477_v59  ;;  %v493_v43 = vsel %vm488_vm3, %v479_v42, %v481_v33  ;;  %v538_v59 = vmul.f32 %v517_v16, %v2029_v35 }
 0x162   : > { %v507_v45 = vadd.f32 %v491_v7, %v329_v41  ;;  %v508_v22 = vadd.f32 %v492_v9, %v333_v31  ;;  %v509_v57 = vadd.f32 %v493_v43, %v321_v21  ;;  %v541_v21 = vmul.f32 %v529_v50, %v2025_v32 }
 0x164   : > { %v483_v28 = vpop.permute.xlu1 %482  ;;  %v544_v55 = vadd.f32 %v536_v8, %v507_v45  ;;  %v545_v2 = vadd.f32 %v537_v38, %v508_v22  ;;  %v485_v23 = vpop.permute.xlu0 %484  ;;  %v546_v38 = vadd.f32 %v538_v59, %v509_v57 }
 0x165   : > { %v494_v15 = vsel %vm488_vm3, %v481_v33, %v483_v28  ;;  %v495_v25 = vsel %vm488_vm3, %v483_v28, %v485_v23  ;;  %v496_v63 = vsel %vm488_vm3, %v485_v23, %v487_v14  ;;  %v540_v14 = vmul.f32 %v525_v1, %v2041_v39 }
 0x166   : > { %v510_v24 = vadd.f32 %v494_v15, %v325_v52  ;;  %v511_v7 = vadd.f32 %v495_v25, %v329_v41  ;;  %v512_v16 = vadd.f32 %v496_v63, %v333_v31  ;;  %v307_v15 = vld [vmem:[#allocation8 + $0x4] ss:$8 sm:$0xf] }
 0x167   : > { %v796_v25 = vrot.slane %v307_v15, %v1993_v4 }
 0x168   : > { %v608_v29 = vpop.permute.xlu1 %607  ;;  %v610_v26 = vpop.permute.xlu0 %609  ;;  %v547_v22 = vadd.f32 %v539_v37, %v510_v24  ;;  %v548_v43 = vadd.f32 %v540_v14, %v511_v7  ;;  %v549_v50 = vadd.f32 %v541_v21, %v512_v16  ;;  %v804_v37 = vrot.slane %v307_v15, %v1991_v3 }
 0x169   : > { %v625_v30 = vsel %vm439_vm2, %v606_v54, %v608_v29  ;;  %v626_v42 = vsel %vm439_vm2, %v608_v29, %v610_v26  ;;  %v800_v29 = vrot.slane %v307_v15, %v1997_v6  ;;  %v813_v59 = vmul.f32 %v796_v25, %v2158_v60 }
 0x16a   : > { %v2395_v13 = vadd.f32 %v625_v30, %v542_v40  ;;  %v2398_v53 = vadd.f32 %v626_v42, %v543_v19  ;;  %v815_v16 = vmul.f32 %v804_v37, %v2194_v44 }
 0x16b   : > { %v814_v24 = vmul.f32 %v800_v29, %v2200_v46  ;;  %v821_v46 = vmul.f32 %v796_v25, %v2155_v58 }
 0x16c   : > { %v612_v8 = vpop.permute.xlu1 %611  ;;  %v618_v9 = vpop.permute.xlu0 %617 }
 0x16d   : > { %v627_v54 = vsel %vm439_vm2, %v610_v26, %v612_v8  ;;  %v628_v40 = vsel %vm439_vm2, %v612_v8, %v614_v20  ;;  %v629_v45 = vsel %vm439_vm2, %v616_v27, %v618_v9  ;;  %v808_v26 = vrot.slane %v307_v15, %v1995_v5 }
 0x16e   : > { %v2405_v33 = vadd.f32 %v627_v54, %v544_v55  ;;  %v644_v19 = vadd.f32 %v628_v40, %v545_v2  ;;  %v2408_v11 = vadd.f32 %v629_v45, %v546_v38  ;;  %v837_v38 = vrot.slane %v813_v59, 1 }
 0x16f   : > { %v816_v21 = vmul.f32 %v808_v26, %v2141_v49  ;;  %v820_v60 = vmul.f32 %v808_v26, %v2025_v32  ;;  %v819_v54 = vmul.f32 %v804_v37, %v2041_v39  ;;  %v822_v40 = vmul.f32 %v800_v29, %v2209_v56 }
 0x170   : > { %v620_v52 = vpop.permute.xlu1 %619  ;;  %v622_v41 = vpop.permute.xlu0 %621  ;;  %v824_v39 = vmul.f32 %v808_v26, %v2136_v47  ;;  %v823_v56 = vmul.f32 %v804_v37, %v2227_v18 }
 0x171   : > { %v630_v1 = vsel %vm439_vm2, %v618_v9, %v620_v52  ;;  %v631_v28 = vsel %vm439_vm2, %v620_v52, %v622_v41  ;;  %v632_v20 = vsel %vm439_vm2, %v622_v41, %v2371_v10  ;;  %v817_v10 = vmul.f32 %v796_v25, %v2029_v35 }
 0x172   : > { %v2411_v31 = vadd.f32 %v630_v1, %v547_v22  ;;  %v2416_v55 = vadd.f32 %v631_v28, %v548_v43  ;;  %v2418_v2 = vadd.f32 %v632_v20, %v549_v50  ;;  %v818_v35 = vmul.f32 %v800_v29, %v2032_v36 }
 0x173   : > { %v838_v14 = vrot.slane %v817_v10, 1  ;;  %v840_v9 = vrot.slane %v814_v24, 1  ;;  %v846_v1 = vrot.slane %v816_v21, 1  ;;  %v847_v32 = vrot.slane %v820_v60, 1 }
 0x174   : > { %v759_v27 = vpop.permute.xlu1 %758  ;;  %v749_v23 = vpop.permute.xlu0 %748  ;;  %v841_v43 = vrot.slane %v818_v35, 1  ;;  %v843_v36 = vrot.slane %v815_v16, 1  ;;  %v844_v50 = vrot.slane %v819_v54, 1  ;;  %v851_v41 = vrot.slane %v822_v40, 1 }
 0x175   : > { %v839_v52 = vsel %vm722_vm4, %v837_v38, %v838_v14  ;;  %v849_v29 = vrot.slane %v821_v46, 1  ;;  %v313_v35 = vld [vmem:[#allocation8 + $0x7] ss:$8 sm:$0xf] }
 0x176   : > { %v842_v25 = vsel %vm722_vm4, %v840_v9, %v841_v43  ;;  %v845_v47 = vsel %vm722_vm4, %v843_v36, %v844_v50  ;;  %v852_v40 = vsel %vm722_vm4, %v841_v43, %v851_v41 }
 0x178   : > { %v2421_v63 = vpop.permute.xlu1 %766  ;;  %v757_v57 = vpop.permute.xlu0 %756 }
 0x17c   : > { %v2425_v30 = vpop.permute.xlu1 %973  ;;  %v2429_v42 = vpop.permute.xlu0 %963 }
 0x180   : > { %v2433_v8 = vpop.permute.xlu1 %981  ;;  %v2436_v7 = vpop.permute.xlu0 %971 }
 0x184   : > { %v751_v45 = vpop.permute.xlu1 %750  ;;  %v2446_v22 = vpop.permute.xlu0 %1106 }
 0x185   : > { %v768_v49 = vsel %vm488_vm3, %v749_v23, %v751_v45  ;;  %v848_v23 = vsel %vm722_vm4, %v846_v1, %v847_v32 }
 0x186   : > { %v784_v44 = vadd.f32 %v768_v49, %v2395_v13 }
 0x188   : > { %v755_v58 = vpop.permute.xlu1 %754  ;;  %v865_v28 = vadd.f32 %v839_v52, %v784_v44  ;;  %v753_v15 = vpop.permute.xlu0 %752 }
 0x189   : > { %v771_v20 = vsel %vm488_vm3, %v755_v58, %v757_v57  ;;  %v769_v10 = vsel %vm488_vm3, %v751_v45, %v753_v15  ;;  %v770_v13 = vsel %vm488_vm3, %v753_v15, %v755_v58  ;;  %v853_v57 = vrot.slane %v823_v56, 1  ;;  %v1621_v58 = vld [vmem:[#allocation2 + $0x38] sm:$0xff] }
 0x18a   : > { %v787_v59 = vadd.f32 %v771_v20, %v644_v19  ;;  %v785_v18 = vadd.f32 %v769_v10, %v2398_v53  ;;  %v786_v26 = vadd.f32 %v770_v13, %v2405_v33  ;;  %v850_v19 = vsel %vm722_vm4, %v838_v14, %v849_v29 }
 0x18b   : > { %v855_v53 = vrot.slane %v824_v39, 1  ;;  %v2470_v45 = vrot.slane %v313_v35, %v1993_v4  ;;  %v854_v43 = vsel %vm722_vm4, %v844_v50, %v853_v57  ;;  %v1162_v50 = vrot.slane %v313_v35, %v1991_v3 }
 0x18c   : > { %v763_v37 = vpop.permute.xlu1 %762  ;;  %v2459_v24 = vadd.f32 %v848_v23, %v787_v59  ;;  %v761_v38 = vpop.permute.xlu0 %760  ;;  %v2461_v21 = vadd.f32 %v842_v25, %v785_v18  ;;  %v867_v60 = vadd.f32 %v845_v47, %v786_v26  ;;  %v1622_v25 = vld [vmem:[#allocation2 + $0x48] sm:$0xff] }
 0x18d   : > { %v772_v16 = vsel %vm488_vm3, %v759_v27, %v761_v38  ;;  %v773_v54 = vsel %vm488_vm3, %v761_v38, %v763_v37  ;;  %v1171_v41 = vmul.f32 %v2470_v45, %v2260_v61  ;;  %v1173_v23 = vmul.f32 %v1162_v50, %v2265_v62 }
 0x18e   : > { %v788_v33 = vadd.f32 %v772_v16, %v2408_v11  ;;  %v789_v9 = vadd.f32 %v773_v54, %v2411_v31  ;;  %v856_v11 = vsel %vm722_vm4, %v847_v32, %v855_v53  ;;  %v2499_v29 = vmul.f32 %v1622_v25, %v1162_v50 }
 0x18f   : > { %v1195_v20 = vrot.slane %v1171_v41, 2  ;;  %v1201_v18 = vrot.slane %v1173_v23, 2  ;;  %v1158_v53 = vrot.slane %v313_v35, %v1997_v6  ;;  %v1624_v41 = vld [vmem:[#allocation2 + $0x50] sm:$0xff] }
 0x190   : > { %v966_v46 = vpop.permute.xlu1 %965  ;;  %v765_v52 = vpop.permute.xlu0 %764  ;;  %v2472_v49 = vadd.f32 %v850_v19, %v788_v33  ;;  %v2474_v14 = vadd.f32 %v852_v40, %v789_v9  ;;  %v1202_v62 = vrot.slane %v2499_v29, 2  ;;  %v1166_v9 = vrot.slane %v313_v35, %v1995_v5 }
 0x191   : > { %v774_v27 = vsel %vm488_vm3, %v763_v37, %v765_v52  ;;  %v775_v1 = vsel %vm488_vm3, %v765_v52, %v2421_v63  ;;  %v2490_v63 = vmul.f32 %v1621_v58, %v2470_v45  ;;  %v1180_v5 = vmul.f32 %v1158_v53, %v2297_v48 }
 0x192   : > { %v790_v31 = vadd.f32 %v774_v27, %v2416_v55  ;;  %v791_v36 = vadd.f32 %v775_v1, %v2418_v2  ;;  %v983_v55 = vsel %vm439_vm2, %v2429_v42, %v966_v46  ;;  %v1623_v27 = vld [vmem:[#allocation2 + $0x40] sm:$0xff]  ;;  %v2521_v58 = vmul.f32 %v1624_v41, %v1166_v9 }
 0x193   : > { %v1196_v15 = vrot.slane %v2490_v63, 2  ;;  %v999_v61 = vadd.f32 %v983_v55, %v865_v28  ;;  %v1176_v1 = vmul.f32 %v1623_v27, %v1158_v53 }
 0x194   : > { %v970_v4 = vpop.permute.xlu1 %969  ;;  %v968_v44 = vpop.permute.xlu0 %967  ;;  %v2483_v39 = vadd.f32 %v854_v43, %v790_v31  ;;  %v2485_v56 = vadd.f32 %v856_v11, %v791_v36  ;;  %v1174_v31 = vmul.f32 %v1166_v9, %v2289_v34 }
 0x195   : > { %v1197_v42 = vsel %vm1080_vm5, %v1195_v20, %v1196_v15  ;;  %v985_v13 = vsel %vm439_vm2, %v968_v44, %v970_v4  ;;  %v984_v43 = vsel %vm439_vm2, %v966_v46, %v968_v44  ;;  %v1199_v20 = vrot.slane %v1176_v1, 2 }
 0x196   : > { %v1001_v57 = vadd.f32 %v985_v13, %v867_v60  ;;  %v1172_v60 = vmul.f32 %v1158_v53, %v2276_v17  ;;  %v1000_v35 = vadd.f32 %v984_v43, %v2461_v21  ;;  %v1179_v17 = vmul.f32 %v2470_v45, %v2305_v51 }
 0x197   : > { %v986_v46 = vsel %vm439_vm2, %v970_v4, %v2436_v7  ;;  %v1204_v25 = vrot.slane %v1174_v31, 2  ;;  %v1209_v21 = vrot.slane %v1180_v5, 2  ;;  %v1181_v45 = vmul.f32 %v1162_v50, %v2314_v12 }
 0x198   : > { %v2493_v32 = vpop.permute.xlu1 %977  ;;  %v976_v2 = vpop.permute.xlu0 %975  ;;  %v1198_v55 = vrot.slane %v1172_v60, 2 }
 0x199   : > { %v987_v7 = vsel %vm439_vm2, %v2425_v30, %v976_v2  ;;  %v988_v4 = vsel %vm439_vm2, %v976_v2, %v2493_v32  ;;  %v1210_v60 = vsel %vm1080_vm5, %v1199_v20, %v1209_v21 }
 0x19a   : > { %v1200_v48 = vsel %vm1080_vm5, %v1198_v55, %v1199_v20 }
 0x19c   : > { %v1109_v59 = vpop.permute.xlu1 %1108  ;;  %v2503_v3 = vpop.permute.xlu0 %979 }
 0x19d   : > { %v1126_v10 = vsel %vm488_vm3, %v2446_v22, %v1109_v59  ;;  %v1203_v22 = vsel %vm1080_vm5, %v1201_v18, %v1202_v62  ;;  %v1182_v18 = vmul.f32 %v1166_v9, %v2308_v0 }
 0x19e   : > { %v1142_v47 = vadd.f32 %v1126_v10, %v999_v61  ;;  %v1205_v61 = vrot.slane %v2521_v58, 2 }
 0x19f   : > { %v1213_v63 = vrot.slane %v1182_v18, 2 }
 0x1a0   : > { %v1113_v26 = vpop.permute.xlu1 %1112  ;;  %v1223_v37 = vadd.f32 %v1197_v42, %v1142_v47  ;;  %v1111_v28 = vpop.permute.xlu0 %1110  ;;  %v1002_v42 = vadd.f32 %v986_v46, %v2459_v24  ;;  %v1207_v47 = vrot.slane %v1179_v17, 2  ;;  %v1206_v12 = vsel %vm1080_vm5, %v1204_v25, %v1205_v61 }
 0x1a1   : > { %v1128_v38 = vsel %vm488_vm3, %v1111_v28, %v1113_v26  ;;  %v1127_v6 = vsel %vm488_vm3, %v1109_v59, %v1111_v28  ;;  %v1004_v28 = vadd.f32 %v988_v4, %v2474_v14 }
 0x1a2   : > { %v1144_v19 = vadd.f32 %v1128_v38, %v1001_v57  ;;  %v1143_v34 = vadd.f32 %v1127_v6, %v1000_v35  ;;  %v1003_v57 = vadd.f32 %v987_v7, %v2472_v49  ;;  %v1208_v9 = vsel %vm1080_vm5, %v1196_v15, %v1207_v47 }
 0x1a4   : > { %v1117_v16 = vpop.permute.xlu1 %1116  ;;  %v1115_v54 = vpop.permute.xlu0 %1114  ;;  %v1225_v40 = vadd.f32 %v1203_v22, %v1144_v19  ;;  %v1224_v24 = vadd.f32 %v1200_v48, %v1143_v34  ;;  %v1211_v19 = vrot.slane %v1181_v45, 2 }
 0x1a5   : > { %v1129_v59 = vsel %vm488_vm3, %v1113_v26, %v1115_v54  ;;  %v989_v54 = vsel %vm439_vm2, %v2493_v32, %v2503_v3 }
 0x1a6   : > { %v1145_v26 = vadd.f32 %v1129_v59, %v1002_v42  ;;  %v1005_v15 = vadd.f32 %v989_v54, %v2483_v39  ;;  %v1212_v39 = vsel %vm1080_vm5, %v1202_v62, %v1211_v19 }
 0x1a8   : > { %v2515_v33 = vpop.permute.xlu1 %1120  ;;  %v1119_v52 = vpop.permute.xlu0 %1118  ;;  %v1226_v14 = vadd.f32 %v1206_v12, %v1145_v26 }
 0x1a9   : > { %v1130_v30 = vsel %vm488_vm3, %v1117_v16, %v1119_v52  ;;  %v1131_v50 = vsel %vm488_vm3, %v1119_v52, %v2515_v33  ;;  %v990_v16 = vsel %vm439_vm2, %v2503_v3, %v2433_v8 }
 0x1aa   : > { %v1146_v52 = vadd.f32 %v1130_v30, %v1003_v57  ;;  %v1147_v49 = vadd.f32 %v1131_v50, %v1004_v28  ;;  %v1006_v3 = vadd.f32 %v990_v16, %v2485_v56  ;;  %v1214_v56 = vsel %vm1080_vm5, %v1205_v61, %v1213_v63 }
 0x1ac   : > { %v1125_v11 = vpop.permute.xlu1 %1124  ;;  %v1123_v36 = vpop.permute.xlu0 %1122  ;;  %v1227_v58 = vadd.f32 %v1208_v9, %v1146_v52 }
 0x1ad   : > { %v1132_v32 = vsel %vm488_vm3, %v2515_v33, %v1123_v36  ;;  %v1133_v27 = vsel %vm488_vm3, %v1123_v36, %v1125_v11  ;;  %v1228_v33 = vadd.f32 %v1210_v60, %v1147_v49 }
 0x1ae   : > { %v1148_v31 = vadd.f32 %v1132_v32, %v1005_v15  ;;  %v1149_v41 = vadd.f32 %v1133_v27, %v1006_v3 }
 0x1b0   : > { %v1324_v44 = vpop.permute.xlu1 %1323  ;;  %v1322_v23 = vpop.permute.xlu0 %1321  ;;  %v1229_v35 = vadd.f32 %v1212_v39, %v1148_v31  ;;  %v1230_v17 = vadd.f32 %v1214_v56, %v1149_v41 }
 0x1b1   : > { %v1341_v10 = vsel %vm439_vm2, %v1322_v23, %v1324_v44 }
 0x1b2   : > { %v1357_v51 = vadd.f32 %v1341_v10, %v1223_v37 }
 0x1b4   : > { %v1328_v13 = vpop.permute.xlu1 %1327  ;;  %1365 = vst [vmem:[%s2543_s8] sm:$0xff] %v1357_v51  ;;  %v1326_v37 = vpop.permute.xlu0 %1325 }
 0x1b5   : > { %v1342_v2 = vsel %vm439_vm2, %v1324_v44, %v1326_v37  ;;  %v1343_v0 = vsel %vm439_vm2, %v1326_v37, %v1328_v13 }
 0x1b6   : > { %v1358_v38 = vadd.f32 %v1342_v2, %v1224_v24  ;;  %v1359_v22 = vadd.f32 %v1343_v0, %v1225_v40 }
 0x1b8   : > { %v1332_v53 = vpop.permute.xlu1 %1331  ;;  %1366 = vst [vmem:[%s2543_s8 + $0x8] sm:$0xff] %v1358_v38  ;;  %1367 = vst [vmem:[%s2543_s8 + $0x10] sm:$0xff] %v1359_v22  ;;  %v1330_v40 = vpop.permute.xlu0 %1329 }
 0x1b9   : > { %v1344_v8 = vsel %vm439_vm2, %v1328_v13, %v1330_v40 }
 0x1ba   : > { %v1360_v1 = vadd.f32 %v1344_v8, %v1226_v14 }
 0x1bc   : > { %v1336_v43 = vpop.permute.xlu1 %1335  ;;  %1368 = vst [vmem:[%s2543_s8 + $0x18] sm:$0xff] %v1360_v1  ;;  %v1334_v55 = vpop.permute.xlu0 %1333 }
 0x1bd   : > { %v1345_v11 = vsel %vm439_vm2, %v1332_v53, %v1334_v55  ;;  %v1346_v36 = vsel %vm439_vm2, %v1334_v55, %v1336_v43 }
 0x1be   : > { %v1361_v6 = vadd.f32 %v1345_v11, %v1227_v58  ;;  %v1362_v20 = vadd.f32 %v1346_v36, %v1228_v33 }
 0x1c0   : > { %v1340_v5 = vpop.permute.xlu1 %1339  ;;  %1369 = vst [vmem:[%s2543_s8 + $0x20] sm:$0xff] %v1361_v6  ;;  %1370 = vst [vmem:[%s2543_s8 + $0x28] sm:$0xff] %v1362_v20  ;;  %v1338_v46 = vpop.permute.xlu0 %1337 }
 0x1c1   : > { %v1347_v29 = vsel %vm439_vm2, %v1336_v43, %v1338_v46  ;;  %v1348_v62 = vsel %vm439_vm2, %v1338_v46, %v1340_v5 }
 0x1c2   : > { %v1363_v44 = vadd.f32 %v1347_v29, %v1229_v35  ;;  %v1364_v34 = vadd.f32 %v1348_v62, %v1230_v17 }
 0x1c4   : > { %1371 = vst [vmem:[%s2543_s8 + $0x30] sm:$0xff] %v1363_v44  ;;  %1372 = vst [vmem:[%s2543_s8 + $0x38] sm:$0xff] %v1364_v34 }
 0x1c5   : > { %1720 = shalt.err (!%p1717_p6)
}
 0x1c6   : > { %s1721_s2 = scalar_lea.hbm %s2590_s18, 1024  ;;  %s1725_s20 = scalar_lea.hbm %s2645_s4, 2048 }
 0x1c7   : > { %p1722_p9 = scmp.ne.s32.totalorder %s2590_s18, %s1721_s2  ;;  %p1726_p11 = scmp.lt.s32.totalorder %s2590_s18, %s2645_s4 }
 0x1c8   : > { %p1727_p3 = scmp.lt.s32.totalorder %s1725_s20, %s1721_s2 }
 0x1c9   : > { %p1723_p12 = pnand %p1722_p9, %p1918_p0 }
 0x1ca   : > { %p1728_p1 = por %p1727_p3, %p1726_p11 }
 0x1cb   : > { %p1724_p13 = pneg %p1723_p12 }
 0x1cd   : > { %p1729_p4 = pnand %p1728_p1, %p1724_p13 }
 0x1cf   : > { %1732 = shalt.err (!%p1729_p4)
}
 0x1d0   : > { %s1806_s6 = smov 512  }
 0x1d1   : > { %1545 = dma.vmem_to_hbm [thread:$0]  (%p1918_p0), %s2583_s12, 1024, %s2590_s18, %s1374_s7, %s1806_s6, %s1806_s6, %s1804_s23  }
 0x1d2 PF: > { %s2672_s21 = sld [smem:[#allocation15_spill]]  ;;  %s1405_s22 = sand.u32 1, %s1775_s15  }
 0x1d3   : > { %p2673_p8 = scmp.ne.s32.totalorder %s2657_s24, 0  ;;  %s1406_s30 = scalar_lea.sflag [#allocation5], %s1405_s22 }
 0x1d5   : > { %p1559_p5 = pnand %p1516_p10, %p2673_p8 }
 0x1d7   : > { %p1560_p7 = pneg %p1559_p5 }
 0x1d9   : > { %1770 = dma.done.wait (%p1560_p7), %s1406_s30, 1024  }
 0x1da   : > { %1772 = vsyncadd (%p1560_p7), %s1406_s30, 4294966272  ;;  %s23_s20 = sadd.s32 1, %s2672_s21   ;;  %s2674_s11 = sld [smem:[#allocation14_spill]] }
 0x1db   : > { %p20_p2 = scmp.ge.s32.totalorder %s23_s20, 4   ;;  %s2675_s17 = sld [smem:[#allocation17_spill]] }
 0x1dc   : > { %s2676_s0 = sld [smem:[#allocation16_spill]]  ;;  %s2677_s15 = smov %s1779_s16 }
 0x1dd   : > { %s2679_s18 = smov %s1791_s19 }
 0x1de   :  { %22 = sbr.rel (!%p20_p2) target bundleno = 11 (0xb), region = 109 }
 0x1e0   : > { %s2678_s16 = smov %s2674_s11 }
 0x1e2   : > { %s2680_s19 = smov %s2676_s0 }
 0x1e3   :  { %1411 = vsyncpa [#allocation4], 1 }
 0x1e4   :  { %1413 = vsyncpa [#allocation4 + $0x1], 1 }
 0x1e5   :  { %1414 = vsyncpa [#allocation7], 1 }
 0x1e6   :  { %1416 = vsyncpa [#allocation7 + $0x1], 1 }
 0x1e7   :  { %1417 = vsyncpa [#allocation5], 1 }
 0x1e8   :  { %1419 = vsyncpa [#allocation5 + $0x1], 1 }

</bundles_post_ra>
